<compile_context>
chip_gen: v7x
topology: tpu7x:2x2x1
jax: 0.10.0
libtpu: 0.0.40
codegen_flags: <defaults>
</compile_context>

<pallas_src>
import functools

import jax
import jax.numpy as jnp
from jax.experimental import pallas as pl
from jax.experimental.pallas import tpu as pltpu


def _silu(v):
    # x * sigmoid(x) in the numerically stable tanh form (EUP op, no overflow).
    return v * (0.5 * (jnp.tanh(0.5 * v) + 1.0))


# ----------------------------------------------------------------------------
# Fused Pallas kernel: whole PConv forward (both batch items) in one grid step
# ----------------------------------------------------------------------------
def _pconv_kernel(xph_ref, wstack_ref, wcat_ref, bias_ref, o_ref, y_scr, *,
                  nbatch, s, c4, c2, Wp, L1, L2, Hc, Wc, branch_taps):
    # xph_ref   : (nbatch*s*s, cin, Hp*Wp)  phase-decomposed, k-padded input planes
    # wstack_ref: (2*k*c4, cin)   every (1,k)+(k,1) tap filter, BN scale folded in
    # wcat_ref  : (4*c2, c2)      every 2x2 tap filter, BN scale folded in
    # bias_ref  : (2*c4 + c2, 1)  folded BN biases [cw | ch | cat]
    # o_ref     : (nbatch, c2, Hc*Wc)  lane-dense output (NCHW with HW flattened)
    # y_scr     : (c2, L1) VMEM scratch: concatenated activated y, channels on
    #             sublanes, flat spatial (row stride Wp) on lanes
    f32 = jnp.float32
    wstack = wstack_ref[...]
    wcat = wcat_ref[...]

    # Only the phase planes actually referenced by some tap (static python).
    needed_planes = sorted({(p, q) for taps in branch_taps for (p, q, _, _) in taps})

    for n in range(nbatch):
        # ---- stage 1: ONE MXU pass per phase plane computes every tap filter ----
        p_planes = {}
        for (p, q) in needed_planes:
            plane = xph_ref[(n * s + p) * s + q]                       # (cin, Hp*Wp)
            p_planes[(p, q)] = jnp.dot(wstack, plane,
                                       preferred_element_type=f32)     # (2k*c4, Hp*Wp)

        # Combine taps with flat lane shifts, add folded-BN bias, SiLU, write y.
        # Channel order [yw0 | yw1 | yh0 | yh1] == torch.cat(..., dim=1).
        for g, taps in enumerate(branch_taps):
            acc = None
            for (p, q, off, row0) in taps:
                piece = p_planes[(p, q)][row0:row0 + c4, off:off + L1]
                acc = piece if acc is None else acc + piece
            brow = 0 if g < 2 else c4
            acc = acc + bias_ref[brow:brow + c4]                        # (c4,1) lane bcast
            y_scr[g * c4:(g + 1) * c4, :] = _silu(acc)

        # ---- stage 2: the 2x2 "cat" conv as ONE matmul + 4 flat lane shifts ----
        q2 = jnp.dot(wcat, y_scr[...], preferred_element_type=f32)      # (4*c2, L1)
        out = None
        for di in range(2):
            for dj in range(2):
                blk = (di * 2 + dj) * c2
                off = di * Wp + dj
                piece = q2[blk:blk + c2, off:off + L2]
                out = piece if out is None else out + piece
        out = _silu(out + bias_ref[2 * c4:2 * c4 + c2])                  # (c2, L2)

        # Valid columns sit at flat offsets i*Wp + [0, Wc); pack them densely into
        # the (c2, Hc*Wc) output block (256-lane-wide stores for the main test case).
        for i in range(Hc):
            o_ref[n, :, i * Wc:(i + 1) * Wc] = out[:, i * Wp:i * Wp + Wc]


# ----------------------------------------------------------------------------
# Wrapper: padding / phase decomposition / weight & BN folding, one pallas_call
# ----------------------------------------------------------------------------
def _fold_bn(bn, eps=1e-5):
    gamma, beta, mean, var = bn
    scale = gamma / jnp.sqrt(var + eps)
    return scale, beta - mean * scale


def pconv_forward(x_nchw, params, kernel_size, stride):
    N, c1, H, W = x_nchw.shape
    k, s = int(kernel_size), int(stride)
    assert s >= 1
    c4 = params["cw_w"].shape[0]
    c2 = params["cat_w"].shape[0]
    assert c2 == 4 * c4

    Ho, Wo = H // s + 1, W // s + 1           # branch-conv output (same for all 4 pads)
    Hc, Wc = Ho - 1, Wo - 1                   # 2x2 cat-conv output
    Mc = Hc * Wc
    Hu, Wu = H + 2 * k, W + 2 * k             # one universal zero-pad of k per side
    Hp, Wp = (Hu + s - 1) // s, (Wu + s - 1) // s   # phase-plane size
    Lp = Hp * Wp
    L1 = (Ho - 1) * Wp + Wo                   # flat length of a branch output
    L2 = (Hc - 1) * Wp + Wc                   # flat length of the cat-conv output

    # --- input: single zero-pad + phase decomposition (done once, outside the kernel) ---
    xpad = jnp.pad(x_nchw.astype(jnp.float32),
                   ((0, 0), (0, 0), (k, k + Hp * s - Hu), (k, k + Wp * s - Wu)))
    # (N, c1, Hp, s, Wp, s) -> (N, s, s, c1, Hp, Wp) -> (N*s*s, c1, Hp*Wp)
    xph = xpad.reshape(N, c1, Hp, s, Wp, s).transpose(0, 3, 5, 1, 2, 4)
    xph = xph.reshape(N * s * s, c1, Lp)

    # --- weights: fold BN scales, stack every tap filter into one matrix ---
    s_cw, b_cw = _fold_bn(params["cw_bn"])
    s_ch, b_ch = _fold_bn(params["ch_bn"])
    s_ct, b_ct = _fold_bn(params["cat_bn"])
    wcw = params["cw_w"][:, :, 0, :] * s_cw[:, None, None]       # (c4, c1, k)
    wch = params["ch_w"][:, :, :, 0] * s_ch[:, None, None]       # (c4, c1, k)
    w_stack = jnp.concatenate(
        [jnp.transpose(wcw, (2, 0, 1)).reshape(k * c4, c1),      # rows t*c4 + o     (cw)
         jnp.transpose(wch, (2, 0, 1)).reshape(k * c4, c1)],     # rows (k+t)*c4 + o (ch)
        axis=0).astype(jnp.float32)                              # (2*k*c4, c1)
    wcat = params["cat_w"] * s_ct[:, None, None, None]           # (c2, c2, 2, 2)
    wcat_stack = jnp.transpose(wcat, (2, 3, 0, 1)).reshape(4 * c2, c2).astype(jnp.float32)
    bias_all = jnp.concatenate([b_cw, b_ch, b_ct])[:, None].astype(jnp.float32)  # (2c4+c2, 1)

    # --- per-tap (phase plane, flat lane offset, weight-row block), all static python ---
    corners = (
        lambda t: (k - 1, t),        # yw0: ZeroPad2d(l=k, r=0, t=1, b=0) + (1,k) conv
        lambda t: (k, k + t),        # yw1: ZeroPad2d(l=0, r=k, t=0, b=1) + (1,k) conv
        lambda t: (t, k),            # yh0: ZeroPad2d(l=0, r=1, t=k, b=0) + (k,1) conv
        lambda t: (k + t, k - 1),    # yh1: ZeroPad2d(l=1, r=0, t=0, b=k) + (k,1) conv
    )
    branch_taps = []
    for g in range(4):
        taps = []
        for t in range(k):
            r0, c0 = corners[g](t)
            row0 = t * c4 if g < 2 else (k + t) * c4
            taps.append((r0 % s, c0 % s, (r0 // s) * Wp + (c0 // s), row0))
        branch_taps.append(tuple(taps))
    branch_taps = tuple(branch_taps)

    kernel = functools.partial(
        _pconv_kernel, nbatch=N, s=s, c4=c4, c2=c2, Wp=Wp, L1=L1, L2=L2,
        Hc=Hc, Wc=Wc, branch_taps=branch_taps)

    cost = pl.CostEstimate(
        flops=2 * N * (s * s * (2 * k * c4) * c1 * Lp + (4 * c2) * c2 * L1),
        transcendentals=N * (c2 * L1 + c2 * L2),
        bytes_accessed=4 * (xph.size + w_stack.size + wcat_stack.size
                            + bias_all.size + N * c2 * Mc))

    out = pl.pallas_call(
        kernel,
        out_shape=jax.ShapeDtypeStruct((N, c2, Mc), jnp.float32),
        grid_spec=pltpu.PrefetchScalarGridSpec(
            num_scalar_prefetch=0,
            grid=(1,),                    # single step: batch folded into the kernel
            in_specs=[
                pl.BlockSpec((N * s * s, c1, Lp), lambda i: (0, 0, 0)),
                pl.BlockSpec((2 * k * c4, c1), lambda i: (0, 0)),
                pl.BlockSpec((4 * c2, c2), lambda i: (0, 0)),
                pl.BlockSpec((2 * c4 + c2, 1), lambda i: (0, 0)),
            ],
            out_specs=pl.BlockSpec((N, c2, Mc), lambda i: (0, 0, 0)),
            scratch_shapes=[pltpu.VMEM((c2, L1), jnp.float32)],
        ),
        compiler_params=pltpu.CompilerParams(dimension_semantics=("arbitrary",)),
        cost_estimate=cost,
    )(xph, w_stack, wcat_stack, bias_all)

    # (N, c2, Hc*Wc) is already NCHW up to a free reshape (no transpose).
    return out.reshape(N, c2, Hc, Wc)


# ----------------------------------------------------------------------------
# Deterministic parameter init (shapes from PConv.__init__)
# ----------------------------------------------------------------------------
def init_params(key, c1, c2, k):
    kcw, kch, kcat, kb1, kb2, kb3 = jax.random.split(key, 6)

    def bn(c, kk):
        k1, k2, k3, k4 = jax.random.split(kk, 4)
        gamma = 1.0 + 0.1 * jax.random.normal(k1, (c,), jnp.float32)
        beta = 0.1 * jax.random.normal(k2, (c,), jnp.float32)
        mean = 0.1 * jax.random.normal(k3, (c,), jnp.float32)
        var = 0.5 + jnp.abs(jax.random.normal(k4, (c,), jnp.float32))
        return (gamma, beta, mean, var)

    c4 = c2 // 4
    return {
        # PyTorch Conv2d weight layout: (Cout, Cin, kh, kw)
        "cw_w": 0.1 * jax.random.normal(kcw, (c4, c1, 1, k), jnp.float32),
        "ch_w": 0.1 * jax.random.normal(kch, (c4, c1, k, 1), jnp.float32),
        "cat_w": 0.1 * jax.random.normal(kcat, (c2, c2, 2, 2), jnp.float32),
        "cw_bn": bn(c4, kb1),
        "ch_bn": bn(c4, kb2),
        "cat_bn": bn(c2, kb3),
    }


# ----------------------------------------------------------------------------
# Pure-JAX reference (lax.conv) used only to verify the Pallas path
# ----------------------------------------------------------------------------
def _ref_conv_bn_silu(x_nhwc, w_oihw, bn_params, stride, pad_lrtb):
    left, right, top, bottom = pad_lrtb
    xp = jnp.pad(x_nhwc, ((0, 0), (top, bottom), (left, right), (0, 0)))
    w_hwio = jnp.transpose(w_oihw, (2, 3, 1, 0))
    y = jax.lax.conv_general_dilated(
        xp, w_hwio, (stride, stride), "VALID",
        dimension_numbers=("NHWC", "HWIO", "NHWC"),
        precision=jax.lax.Precision.HIGHEST)
    gamma, beta, mean, var = bn_params
    y = (y - mean) / jnp.sqrt(var + 1e-5) * gamma + beta
    return y * jax.nn.sigmoid(y)


def _ref_pconv(x_nchw, params, kernel_size, stride):
    x = jnp.transpose(x_nchw, (0, 2, 3, 1))
    k = kernel_size
    pads = [(k, 0, 1, 0), (0, k, 0, 1), (0, 1, k, 0), (1, 0, 0, k)]
    yw0 = _ref_conv_bn_silu(x, params["cw_w"], params["cw_bn"], stride, pads[0])
    yw1 = _ref_conv_bn_silu(x, params["cw_w"], params["cw_bn"], stride, pads[1])
    yh0 = _ref_conv_bn_silu(x, params["ch_w"], params["ch_bn"], stride, pads[2])
    yh1 = _ref_conv_bn_silu(x, params["ch_w"], params["ch_bn"], stride, pads[3])
    y = jnp.concatenate([yw0, yw1, yh0, yh1], axis=-1)
    out = _ref_conv_bn_silu(y, params["cat_w"], params["cat_bn"], 1, (0, 0, 0, 0))
    return jnp.transpose(out, (0, 3, 1, 2))


if __name__ == "__main__":
    key = jax.random.PRNGKey(0)
    kx, kp = jax.random.split(key)

    N, c1, c2, H, W = 2, 4, 16, 16, 16
    kernel_size = 3

    x = jax.random.normal(kx, (N, c1, H, W), jnp.float32)   # NCHW, like PyTorch
    params = init_params(kp, c1, c2, kernel_size)

    # Check both stride 1 (main case) and stride 2 (addresses the review's concern
    # that the strided path was previously untested).
    for stride in (1, 2):
        fwd = jax.jit(functools.partial(pconv_forward, kernel_size=kernel_size,
                                        stride=stride))
        out = jax.block_until_ready(fwd(x, params))
        ref = _ref_pconv(x, params, kernel_size, stride)
        assert out.shape == ref.shape == (N, c2, H // stride, W // stride), \
            (stride, out.shape, ref.shape)
        max_err = float(jnp.max(jnp.abs(out - ref)))
        assert jnp.allclose(out, ref, atol=2e-3, rtol=2e-3), (stride, max_err)

    print("KERNEL_OK")
</pallas_src>

<mosaic_0001>
module attributes {stable_mosaic.version = 11 : i64} {
  func.func @_pconv_kernel(%arg0: i32, %arg1: memref<2x4x484xf32, #tpu.memory_space<vmem>>, %arg2: memref<24x4xf32, #tpu.memory_space<vmem>>, %arg3: memref<64x16xf32, #tpu.memory_space<vmem>>, %arg4: memref<24x1xf32, #tpu.memory_space<vmem>>, %arg5: memref<2x16x256xf32, #tpu.memory_space<vmem>>, %arg6: memref<16x369xf32, #tpu.memory_space<vmem>>) attributes {dimension_semantics = [#tpu.dimension_semantics<arbitrary>], iteration_bounds = array<i64: 1>, scalar_prefetch = 0 : i64, scratch_operands = 1 : i64, tpu.core_type = #tpu.core_type<tc>, window_params = [{pipeline_mode = #tpu.pipeline_mode<synchronous>, transform_indices = @transform_0, window_bounds = array<i64: 2, 4, 484>}, {pipeline_mode = #tpu.pipeline_mode<synchronous>, transform_indices = @transform_1, window_bounds = array<i64: 24, 4>}, {pipeline_mode = #tpu.pipeline_mode<synchronous>, transform_indices = @transform_2, window_bounds = array<i64: 64, 16>}, {pipeline_mode = #tpu.pipeline_mode<synchronous>, transform_indices = @transform_3, window_bounds = array<i64: 24, 1>}, {pipeline_mode = #tpu.pipeline_mode<synchronous>, transform_indices = @transform_4, window_bounds = array<i64: 2, 16, 256>}]} {
    %c0 = arith.constant 0 : index
    %c0_0 = arith.constant 0 : index
    %0 = vector.load %arg2[%c0, %c0_0] : memref<24x4xf32, #tpu.memory_space<vmem>>, vector<24x4xf32>
    %c0_1 = arith.constant 0 : index
    %c0_2 = arith.constant 0 : index
    %1 = vector.load %arg3[%c0_1, %c0_2] : memref<64x16xf32, #tpu.memory_space<vmem>>, vector<64x16xf32>
    %c0_3 = arith.constant 0 : index
    %c0_4 = arith.constant 0 : index
    %c0_5 = arith.constant 0 : index
    %2 = vector.load %arg1[%c0_3, %c0_4, %c0_5] : memref<2x4x484xf32, #tpu.memory_space<vmem>>, vector<1x4x484xf32>
    %3 = vector.shape_cast %2 : vector<1x4x484xf32> to vector<4x484xf32>
    %cst = arith.constant dense<0.000000e+00> : vector<24x484xf32>
    %4 = tpu.matmul %0, %3, %cst {dimension_numbers = #tpu.dot_dimension_numbers<[1], [0], [0], [1], [0, 0, 1, 1], [], []>} : vector<24x4xf32>, vector<4x484xf32>, vector<24x484xf32> -> vector<24x484xf32>
    %5 = vector.extract_strided_slice %4 {offsets = [0, 44], sizes = [4, 369], strides = [1, 1]} : vector<24x484xf32> to vector<4x369xf32>
    %6 = vector.extract_strided_slice %4 {offsets = [4, 45], sizes = [4, 369], strides = [1, 1]} : vector<24x484xf32> to vector<4x369xf32>
    %7 = arith.addf %5, %6 : vector<4x369xf32>
    %8 = vector.extract_strided_slice %4 {offsets = [8, 46], sizes = [4, 369], strides = [1, 1]} : vector<24x484xf32> to vector<4x369xf32>
    %9 = arith.addf %7, %8 : vector<4x369xf32>
    %c0_6 = arith.constant 0 : index
    %c0_7 = arith.constant 0 : index
    %10 = vector.load %arg4[%c0_6, %c0_7] : memref<24x1xf32, #tpu.memory_space<vmem>>, vector<4x1xf32>
    %11 = vector.broadcast %10 : vector<4x1xf32> to vector<4x369xf32>
    %12 = arith.addf %9, %11 : vector<4x369xf32>
    %cst_8 = arith.constant 5.000000e-01 : f32
    %13 = vector.broadcast %cst_8 : f32 to vector<4x369xf32>
    %14 = arith.mulf %13, %12 : vector<4x369xf32>
    %15 = math.tanh %14 : vector<4x369xf32>
    %cst_9 = arith.constant 1.000000e+00 : f32
    %16 = vector.broadcast %cst_9 : f32 to vector<4x369xf32>
    %17 = arith.addf %15, %16 : vector<4x369xf32>
    %cst_10 = arith.constant 5.000000e-01 : f32
    %18 = vector.broadcast %cst_10 : f32 to vector<4x369xf32>
    %19 = arith.mulf %18, %17 : vector<4x369xf32>
    %20 = arith.mulf %12, %19 : vector<4x369xf32>
    %c0_11 = arith.constant 0 : index
    %c0_12 = arith.constant 0 : index
    %21 = vector.load %arg6[%c0_11, %c0_12] : memref<16x369xf32, #tpu.memory_space<vmem>>, vector<4x369xf32>
    tpu.vector_store %arg6[%c0_11, %c0_12], %20 {strides = array<i32>} : memref<16x369xf32, #tpu.memory_space<vmem>>, vector<4x369xf32>,
    %22 = vector.extract_strided_slice %4 {offsets = [0, 69], sizes = [4, 369], strides = [1, 1]} : vector<24x484xf32> to vector<4x369xf32>
    %23 = vector.extract_strided_slice %4 {offsets = [4, 70], sizes = [4, 369], strides = [1, 1]} : vector<24x484xf32> to vector<4x369xf32>
    %24 = arith.addf %22, %23 : vector<4x369xf32>
    %25 = vector.extract_strided_slice %4 {offsets = [8, 71], sizes = [4, 369], strides = [1, 1]} : vector<24x484xf32> to vector<4x369xf32>
    %26 = arith.addf %24, %25 : vector<4x369xf32>
    %c0_13 = arith.constant 0 : index
    %c0_14 = arith.constant 0 : index
    %27 = vector.load %arg4[%c0_13, %c0_14] : memref<24x1xf32, #tpu.memory_space<vmem>>, vector<4x1xf32>
    %28 = vector.broadcast %27 : vector<4x1xf32> to vector<4x369xf32>
    %29 = arith.addf %26, %28 : vector<4x369xf32>
    %cst_15 = arith.constant 5.000000e-01 : f32
    %30 = vector.broadcast %cst_15 : f32 to vector<4x369xf32>
    %31 = arith.mulf %30, %29 : vector<4x369xf32>
    %32 = math.tanh %31 : vector<4x369xf32>
    %cst_16 = arith.constant 1.000000e+00 : f32
    %33 = vector.broadcast %cst_16 : f32 to vector<4x369xf32>
    %34 = arith.addf %32, %33 : vector<4x369xf32>
    %cst_17 = arith.constant 5.000000e-01 : f32
    %35 = vector.broadcast %cst_17 : f32 to vector<4x369xf32>
    %36 = arith.mulf %35, %34 : vector<4x369xf32>
    %37 = arith.mulf %29, %36 : vector<4x369xf32>
    %c4 = arith.constant 4 : index
    %c0_18 = arith.constant 0 : index
    %38 = vector.load %arg6[%c4, %c0_18] : memref<16x369xf32, #tpu.memory_space<vmem>>, vector<4x369xf32>
    tpu.vector_store %arg6[%c4, %c0_18], %37 {strides = array<i32>} : memref<16x369xf32, #tpu.memory_space<vmem>>, vector<4x369xf32>,
    %39 = vector.extract_strided_slice %4 {offsets = [12, 3], sizes = [4, 369], strides = [1, 1]} : vector<24x484xf32> to vector<4x369xf32>
    %40 = vector.extract_strided_slice %4 {offsets = [16, 25], sizes = [4, 369], strides = [1, 1]} : vector<24x484xf32> to vector<4x369xf32>
    %41 = arith.addf %39, %40 : vector<4x369xf32>
    %42 = vector.extract_strided_slice %4 {offsets = [20, 47], sizes = [4, 369], strides = [1, 1]} : vector<24x484xf32> to vector<4x369xf32>
    %43 = arith.addf %41, %42 : vector<4x369xf32>
    %c4_19 = arith.constant 4 : index
    %c0_20 = arith.constant 0 : index
    %44 = vector.load %arg4[%c4_19, %c0_20] : memref<24x1xf32, #tpu.memory_space<vmem>>, vector<4x1xf32>
    %45 = vector.broadcast %44 : vector<4x1xf32> to vector<4x369xf32>
    %46 = arith.addf %43, %45 : vector<4x369xf32>
    %cst_21 = arith.constant 5.000000e-01 : f32
    %47 = vector.broadcast %cst_21 : f32 to vector<4x369xf32>
    %48 = arith.mulf %47, %46 : vector<4x369xf32>
    %49 = math.tanh %48 : vector<4x369xf32>
    %cst_22 = arith.constant 1.000000e+00 : f32
    %50 = vector.broadcast %cst_22 : f32 to vector<4x369xf32>
    %51 = arith.addf %49, %50 : vector<4x369xf32>
    %cst_23 = arith.constant 5.000000e-01 : f32
    %52 = vector.broadcast %cst_23 : f32 to vector<4x369xf32>
    %53 = arith.mulf %52, %51 : vector<4x369xf32>
    %54 = arith.mulf %46, %53 : vector<4x369xf32>
    %c8 = arith.constant 8 : index
    %c0_24 = arith.constant 0 : index
    %55 = vector.load %arg6[%c8, %c0_24] : memref<16x369xf32, #tpu.memory_space<vmem>>, vector<4x369xf32>
    tpu.vector_store %arg6[%c8, %c0_24], %54 {strides = array<i32>} : memref<16x369xf32, #tpu.memory_space<vmem>>, vector<4x369xf32>,
    %56 = vector.extract_strided_slice %4 {offsets = [12, 68], sizes = [4, 369], strides = [1, 1]} : vector<24x484xf32> to vector<4x369xf32>
    %57 = vector.extract_strided_slice %4 {offsets = [16, 90], sizes = [4, 369], strides = [1, 1]} : vector<24x484xf32> to vector<4x369xf32>
    %58 = arith.addf %56, %57 : vector<4x369xf32>
    %59 = vector.extract_strided_slice %4 {offsets = [20, 112], sizes = [4, 369], strides = [1, 1]} : vector<24x484xf32> to vector<4x369xf32>
    %60 = arith.addf %58, %59 : vector<4x369xf32>
    %c4_25 = arith.constant 4 : index
    %c0_26 = arith.constant 0 : index
    %61 = vector.load %arg4[%c4_25, %c0_26] : memref<24x1xf32, #tpu.memory_space<vmem>>, vector<4x1xf32>
    %62 = vector.broadcast %61 : vector<4x1xf32> to vector<4x369xf32>
    %63 = arith.addf %60, %62 : vector<4x369xf32>
    %cst_27 = arith.constant 5.000000e-01 : f32
    %64 = vector.broadcast %cst_27 : f32 to vector<4x369xf32>
    %65 = arith.mulf %64, %63 : vector<4x369xf32>
    %66 = math.tanh %65 : vector<4x369xf32>
    %cst_28 = arith.constant 1.000000e+00 : f32
    %67 = vector.broadcast %cst_28 : f32 to vector<4x369xf32>
    %68 = arith.addf %66, %67 : vector<4x369xf32>
    %cst_29 = arith.constant 5.000000e-01 : f32
    %69 = vector.broadcast %cst_29 : f32 to vector<4x369xf32>
    %70 = arith.mulf %69, %68 : vector<4x369xf32>
    %71 = arith.mulf %63, %70 : vector<4x369xf32>
    %c12 = arith.constant 12 : index
    %c0_30 = arith.constant 0 : index
    %72 = vector.load %arg6[%c12, %c0_30] : memref<16x369xf32, #tpu.memory_space<vmem>>, vector<4x369xf32>
    tpu.vector_store %arg6[%c12, %c0_30], %71 {strides = array<i32>} : memref<16x369xf32, #tpu.memory_space<vmem>>, vector<4x369xf32>,
    %c0_31 = arith.constant 0 : index
    %c0_32 = arith.constant 0 : index
    %73 = vector.load %arg6[%c0_31, %c0_32] : memref<16x369xf32, #tpu.memory_space<vmem>>, vector<16x369xf32>
    %cst_33 = arith.constant dense<0.000000e+00> : vector<64x369xf32>
    %74 = tpu.matmul %1, %73, %cst_33 {dimension_numbers = #tpu.dot_dimension_numbers<[1], [0], [0], [1], [0, 0, 1, 1], [], []>} : vector<64x16xf32>, vector<16x369xf32>, vector<64x369xf32> -> vector<64x369xf32>
    %75 = vector.extract_strided_slice %74 {offsets = [0, 0], sizes = [16, 346], strides = [1, 1]} : vector<64x369xf32> to vector<16x346xf32>
    %76 = vector.extract_strided_slice %74 {offsets = [16, 1], sizes = [16, 346], strides = [1, 1]} : vector<64x369xf32> to vector<16x346xf32>
    %77 = arith.addf %75, %76 : vector<16x346xf32>
    %78 = vector.extract_strided_slice %74 {offsets = [32, 22], sizes = [16, 346], strides = [1, 1]} : vector<64x369xf32> to vector<16x346xf32>
    %79 = arith.addf %77, %78 : vector<16x346xf32>
    %80 = vector.extract_strided_slice %74 {offsets = [48, 23], sizes = [16, 346], strides = [1, 1]} : vector<64x369xf32> to vector<16x346xf32>
    %81 = arith.addf %79, %80 : vector<16x346xf32>
    %c8_34 = arith.constant 8 : index
    %c0_35 = arith.constant 0 : index
    %82 = vector.load %arg4[%c8_34, %c0_35] : memref<24x1xf32, #tpu.memory_space<vmem>>, vector<16x1xf32>
    %83 = vector.broadcast %82 : vector<16x1xf32> to vector<16x346xf32>
    %84 = arith.addf %81, %83 : vector<16x346xf32>
    %cst_36 = arith.constant 5.000000e-01 : f32
    %85 = vector.broadcast %cst_36 : f32 to vector<16x346xf32>
    %86 = arith.mulf %85, %84 : vector<16x346xf32>
    %87 = math.tanh %86 : vector<16x346xf32>
    %cst_37 = arith.constant 1.000000e+00 : f32
    %88 = vector.broadcast %cst_37 : f32 to vector<16x346xf32>
    %89 = arith.addf %87, %88 : vector<16x346xf32>
    %cst_38 = arith.constant 5.000000e-01 : f32
    %90 = vector.broadcast %cst_38 : f32 to vector<16x346xf32>
    %91 = arith.mulf %90, %89 : vector<16x346xf32>
    %92 = arith.mulf %84, %91 : vector<16x346xf32>
    %93 = vector.extract_strided_slice %92 {offsets = [0, 0], sizes = [16, 16], strides = [1, 1]} : vector<16x346xf32> to vector<16x16xf32>
    %c0_39 = arith.constant 0 : index
    %c0_40 = arith.constant 0 : index
    %c0_41 = arith.constant 0 : index
    %94 = vector.load %arg5[%c0_39, %c0_40, %c0_41] : memref<2x16x256xf32, #tpu.memory_space<vmem>>, vector<1x16x16xf32>
    %95 = vector.shape_cast %94 : vector<1x16x16xf32> to vector<16x16xf32>
    %96 = vector.shape_cast %93 : vector<16x16xf32> to vector<1x16x16xf32>
    tpu.vector_store %arg5[%c0_39, %c0_40, %c0_41], %96 {strides = array<i32>} : memref<2x16x256xf32, #tpu.memory_space<vmem>>, vector<1x16x16xf32>,
    %97 = vector.extract_strided_slice %92 {offsets = [0, 22], sizes = [16, 16], strides = [1, 1]} : vector<16x346xf32> to vector<16x16xf32>
    %c0_42 = arith.constant 0 : index
    %c0_43 = arith.constant 0 : index
    %c16 = arith.constant 16 : index
    %98 = vector.load %arg5[%c0_42, %c0_43, %c16] : memref<2x16x256xf32, #tpu.memory_space<vmem>>, vector<1x16x16xf32>
    %99 = vector.shape_cast %98 : vector<1x16x16xf32> to vector<16x16xf32>
    %100 = vector.shape_cast %97 : vector<16x16xf32> to vector<1x16x16xf32>
    tpu.vector_store %arg5[%c0_42, %c0_43, %c16], %100 {strides = array<i32>} : memref<2x16x256xf32, #tpu.memory_space<vmem>>, vector<1x16x16xf32>,
    %101 = vector.extract_strided_slice %92 {offsets = [0, 44], sizes = [16, 16], strides = [1, 1]} : vector<16x346xf32> to vector<16x16xf32>
    %c0_44 = arith.constant 0 : index
    %c0_45 = arith.constant 0 : index
    %c32 = arith.constant 32 : index
    %102 = vector.load %arg5[%c0_44, %c0_45, %c32] : memref<2x16x256xf32, #tpu.memory_space<vmem>>, vector<1x16x16xf32>
    %103 = vector.shape_cast %102 : vector<1x16x16xf32> to vector<16x16xf32>
    %104 = vector.shape_cast %101 : vector<16x16xf32> to vector<1x16x16xf32>
    tpu.vector_store %arg5[%c0_44, %c0_45, %c32], %104 {strides = array<i32>} : memref<2x16x256xf32, #tpu.memory_space<vmem>>, vector<1x16x16xf32>,
    %105 = vector.extract_strided_slice %92 {offsets = [0, 66], sizes = [16, 16], strides = [1, 1]} : vector<16x346xf32> to vector<16x16xf32>
    %c0_46 = arith.constant 0 : index
    %c0_47 = arith.constant 0 : index
    %c48 = arith.constant 48 : index
    %106 = vector.load %arg5[%c0_46, %c0_47, %c48] : memref<2x16x256xf32, #tpu.memory_space<vmem>>, vector<1x16x16xf32>
    %107 = vector.shape_cast %106 : vector<1x16x16xf32> to vector<16x16xf32>
    %108 = vector.shape_cast %105 : vector<16x16xf32> to vector<1x16x16xf32>
    tpu.vector_store %arg5[%c0_46, %c0_47, %c48], %108 {strides = array<i32>} : memref<2x16x256xf32, #tpu.memory_space<vmem>>, vector<1x16x16xf32>,
    %109 = vector.extract_strided_slice %92 {offsets = [0, 88], sizes = [16, 16], strides = [1, 1]} : vector<16x346xf32> to vector<16x16xf32>
    %c0_48 = arith.constant 0 : index
    %c0_49 = arith.constant 0 : index
    %c64 = arith.constant 64 : index
    %110 = vector.load %arg5[%c0_48, %c0_49, %c64] : memref<2x16x256xf32, #tpu.memory_space<vmem>>, vector<1x16x16xf32>
    %111 = vector.shape_cast %110 : vector<1x16x16xf32> to vector<16x16xf32>
    %112 = vector.shape_cast %109 : vector<16x16xf32> to vector<1x16x16xf32>
    tpu.vector_store %arg5[%c0_48, %c0_49, %c64], %112 {strides = array<i32>} : memref<2x16x256xf32, #tpu.memory_space<vmem>>, vector<1x16x16xf32>,
    %113 = vector.extract_strided_slice %92 {offsets = [0, 110], sizes = [16, 16], strides = [1, 1]} : vector<16x346xf32> to vector<16x16xf32>
    %c0_50 = arith.constant 0 : index
    %c0_51 = arith.constant 0 : index
    %c80 = arith.constant 80 : index
    %114 = vector.load %arg5[%c0_50, %c0_51, %c80] : memref<2x16x256xf32, #tpu.memory_space<vmem>>, vector<1x16x16xf32>
    %115 = vector.shape_cast %114 : vector<1x16x16xf32> to vector<16x16xf32>
    %116 = vector.shape_cast %113 : vector<16x16xf32> to vector<1x16x16xf32>
    tpu.vector_store %arg5[%c0_50, %c0_51, %c80], %116 {strides = array<i32>} : memref<2x16x256xf32, #tpu.memory_space<vmem>>, vector<1x16x16xf32>,
    %117 = vector.extract_strided_slice %92 {offsets = [0, 132], sizes = [16, 16], strides = [1, 1]} : vector<16x346xf32> to vector<16x16xf32>
    %c0_52 = arith.constant 0 : index
    %c0_53 = arith.constant 0 : index
    %c96 = arith.constant 96 : index
    %118 = vector.load %arg5[%c0_52, %c0_53, %c96] : memref<2x16x256xf32, #tpu.memory_space<vmem>>, vector<1x16x16xf32>
    %119 = vector.shape_cast %118 : vector<1x16x16xf32> to vector<16x16xf32>
    %120 = vector.shape_cast %117 : vector<16x16xf32> to vector<1x16x16xf32>
    tpu.vector_store %arg5[%c0_52, %c0_53, %c96], %120 {strides = array<i32>} : memref<2x16x256xf32, #tpu.memory_space<vmem>>, vector<1x16x16xf32>,
    %121 = vector.extract_strided_slice %92 {offsets = [0, 154], sizes = [16, 16], strides = [1, 1]} : vector<16x346xf32> to vector<16x16xf32>
    %c0_54 = arith.constant 0 : index
    %c0_55 = arith.constant 0 : index
    %c112 = arith.constant 112 : index
    %122 = vector.load %arg5[%c0_54, %c0_55, %c112] : memref<2x16x256xf32, #tpu.memory_space<vmem>>, vector<1x16x16xf32>
    %123 = vector.shape_cast %122 : vector<1x16x16xf32> to vector<16x16xf32>
    %124 = vector.shape_cast %121 : vector<16x16xf32> to vector<1x16x16xf32>
    tpu.vector_store %arg5[%c0_54, %c0_55, %c112], %124 {strides = array<i32>} : memref<2x16x256xf32, #tpu.memory_space<vmem>>, vector<1x16x16xf32>,
    %125 = vector.extract_strided_slice %92 {offsets = [0, 176], sizes = [16, 16], strides = [1, 1]} : vector<16x346xf32> to vector<16x16xf32>
    %c0_56 = arith.constant 0 : index
    %c0_57 = arith.constant 0 : index
    %c128 = arith.constant 128 : index
    %126 = vector.load %arg5[%c0_56, %c0_57, %c128] : memref<2x16x256xf32, #tpu.memory_space<vmem>>, vector<1x16x16xf32>
    %127 = vector.shape_cast %126 : vector<1x16x16xf32> to vector<16x16xf32>
    %128 = vector.shape_cast %125 : vector<16x16xf32> to vector<1x16x16xf32>
    tpu.vector_store %arg5[%c0_56, %c0_57, %c128], %128 {strides = array<i32>} : memref<2x16x256xf32, #tpu.memory_space<vmem>>, vector<1x16x16xf32>,
    %129 = vector.extract_strided_slice %92 {offsets = [0, 198], sizes = [16, 16], strides = [1, 1]} : vector<16x346xf32> to vector<16x16xf32>
    %c0_58 = arith.constant 0 : index
    %c0_59 = arith.constant 0 : index
    %c144 = arith.constant 144 : index
    %130 = vector.load %arg5[%c0_58, %c0_59, %c144] : memref<2x16x256xf32, #tpu.memory_space<vmem>>, vector<1x16x16xf32>
    %131 = vector.shape_cast %130 : vector<1x16x16xf32> to vector<16x16xf32>
    %132 = vector.shape_cast %129 : vector<16x16xf32> to vector<1x16x16xf32>
    tpu.vector_store %arg5[%c0_58, %c0_59, %c144], %132 {strides = array<i32>} : memref<2x16x256xf32, #tpu.memory_space<vmem>>, vector<1x16x16xf32>,
    %133 = vector.extract_strided_slice %92 {offsets = [0, 220], sizes = [16, 16], strides = [1, 1]} : vector<16x346xf32> to vector<16x16xf32>
    %c0_60 = arith.constant 0 : index
    %c0_61 = arith.constant 0 : index
    %c160 = arith.constant 160 : index
    %134 = vector.load %arg5[%c0_60, %c0_61, %c160] : memref<2x16x256xf32, #tpu.memory_space<vmem>>, vector<1x16x16xf32>
    %135 = vector.shape_cast %134 : vector<1x16x16xf32> to vector<16x16xf32>
    %136 = vector.shape_cast %133 : vector<16x16xf32> to vector<1x16x16xf32>
    tpu.vector_store %arg5[%c0_60, %c0_61, %c160], %136 {strides = array<i32>} : memref<2x16x256xf32, #tpu.memory_space<vmem>>, vector<1x16x16xf32>,
    %137 = vector.extract_strided_slice %92 {offsets = [0, 242], sizes = [16, 16], strides = [1, 1]} : vector<16x346xf32> to vector<16x16xf32>
    %c0_62 = arith.constant 0 : index
    %c0_63 = arith.constant 0 : index
    %c176 = arith.constant 176 : index
    %138 = vector.load %arg5[%c0_62, %c0_63, %c176] : memref<2x16x256xf32, #tpu.memory_space<vmem>>, vector<1x16x16xf32>
    %139 = vector.shape_cast %138 : vector<1x16x16xf32> to vector<16x16xf32>
    %140 = vector.shape_cast %137 : vector<16x16xf32> to vector<1x16x16xf32>
    tpu.vector_store %arg5[%c0_62, %c0_63, %c176], %140 {strides = array<i32>} : memref<2x16x256xf32, #tpu.memory_space<vmem>>, vector<1x16x16xf32>,
    %141 = vector.extract_strided_slice %92 {offsets = [0, 264], sizes = [16, 16], strides = [1, 1]} : vector<16x346xf32> to vector<16x16xf32>
    %c0_64 = arith.constant 0 : index
    %c0_65 = arith.constant 0 : index
    %c192 = arith.constant 192 : index
    %142 = vector.load %arg5[%c0_64, %c0_65, %c192] : memref<2x16x256xf32, #tpu.memory_space<vmem>>, vector<1x16x16xf32>
    %143 = vector.shape_cast %142 : vector<1x16x16xf32> to vector<16x16xf32>
    %144 = vector.shape_cast %141 : vector<16x16xf32> to vector<1x16x16xf32>
    tpu.vector_store %arg5[%c0_64, %c0_65, %c192], %144 {strides = array<i32>} : memref<2x16x256xf32, #tpu.memory_space<vmem>>, vector<1x16x16xf32>,
    %145 = vector.extract_strided_slice %92 {offsets = [0, 286], sizes = [16, 16], strides = [1, 1]} : vector<16x346xf32> to vector<16x16xf32>
    %c0_66 = arith.constant 0 : index
    %c0_67 = arith.constant 0 : index
    %c208 = arith.constant 208 : index
    %146 = vector.load %arg5[%c0_66, %c0_67, %c208] : memref<2x16x256xf32, #tpu.memory_space<vmem>>, vector<1x16x16xf32>
    %147 = vector.shape_cast %146 : vector<1x16x16xf32> to vector<16x16xf32>
    %148 = vector.shape_cast %145 : vector<16x16xf32> to vector<1x16x16xf32>
    tpu.vector_store %arg5[%c0_66, %c0_67, %c208], %148 {strides = array<i32>} : memref<2x16x256xf32, #tpu.memory_space<vmem>>, vector<1x16x16xf32>,
    %149 = vector.extract_strided_slice %92 {offsets = [0, 308], sizes = [16, 16], strides = [1, 1]} : vector<16x346xf32> to vector<16x16xf32>
    %c0_68 = arith.constant 0 : index
    %c0_69 = arith.constant 0 : index
    %c224 = arith.constant 224 : index
    %150 = vector.load %arg5[%c0_68, %c0_69, %c224] : memref<2x16x256xf32, #tpu.memory_space<vmem>>, vector<1x16x16xf32>
    %151 = vector.shape_cast %150 : vector<1x16x16xf32> to vector<16x16xf32>
    %152 = vector.shape_cast %149 : vector<16x16xf32> to vector<1x16x16xf32>
    tpu.vector_store %arg5[%c0_68, %c0_69, %c224], %152 {strides = array<i32>} : memref<2x16x256xf32, #tpu.memory_space<vmem>>, vector<1x16x16xf32>,
    %153 = vector.extract_strided_slice %92 {offsets = [0, 330], sizes = [16, 16], strides = [1, 1]} : vector<16x346xf32> to vector<16x16xf32>
    %c0_70 = arith.constant 0 : index
    %c0_71 = arith.constant 0 : index
    %c240 = arith.constant 240 : index
    %154 = vector.load %arg5[%c0_70, %c0_71, %c240] : memref<2x16x256xf32, #tpu.memory_space<vmem>>, vector<1x16x16xf32>
    %155 = vector.shape_cast %154 : vector<1x16x16xf32> to vector<16x16xf32>
    %156 = vector.shape_cast %153 : vector<16x16xf32> to vector<1x16x16xf32>
    tpu.vector_store %arg5[%c0_70, %c0_71, %c240], %156 {strides = array<i32>} : memref<2x16x256xf32, #tpu.memory_space<vmem>>, vector<1x16x16xf32>,
    %c1 = arith.constant 1 : index
    %c0_72 = arith.constant 0 : index
    %c0_73 = arith.constant 0 : index
    %157 = vector.load %arg1[%c1, %c0_72, %c0_73] : memref<2x4x484xf32, #tpu.memory_space<vmem>>, vector<1x4x484xf32>
    %158 = vector.shape_cast %157 : vector<1x4x484xf32> to vector<4x484xf32>
    %cst_74 = arith.constant dense<0.000000e+00> : vector<24x484xf32>
    %159 = tpu.matmul %0, %158, %cst_74 {dimension_numbers = #tpu.dot_dimension_numbers<[1], [0], [0], [1], [0, 0, 1, 1], [], []>} : vector<24x4xf32>, vector<4x484xf32>, vector<24x484xf32> -> vector<24x484xf32>
    %160 = vector.extract_strided_slice %159 {offsets = [0, 44], sizes = [4, 369], strides = [1, 1]} : vector<24x484xf32> to vector<4x369xf32>
    %161 = vector.extract_strided_slice %159 {offsets = [4, 45], sizes = [4, 369], strides = [1, 1]} : vector<24x484xf32> to vector<4x369xf32>
    %162 = arith.addf %160, %161 : vector<4x369xf32>
    %163 = vector.extract_strided_slice %159 {offsets = [8, 46], sizes = [4, 369], strides = [1, 1]} : vector<24x484xf32> to vector<4x369xf32>
    %164 = arith.addf %162, %163 : vector<4x369xf32>
    %c0_75 = arith.constant 0 : index
    %c0_76 = arith.constant 0 : index
    %165 = vector.load %arg4[%c0_75, %c0_76] : memref<24x1xf32, #tpu.memory_space<vmem>>, vector<4x1xf32>
    %166 = vector.broadcast %165 : vector<4x1xf32> to vector<4x369xf32>
    %167 = arith.addf %164, %166 : vector<4x369xf32>
    %cst_77 = arith.constant 5.000000e-01 : f32
    %168 = vector.broadcast %cst_77 : f32 to vector<4x369xf32>
    %169 = arith.mulf %168, %167 : vector<4x369xf32>
    %170 = math.tanh %169 : vector<4x369xf32>
    %cst_78 = arith.constant 1.000000e+00 : f32
    %171 = vector.broadcast %cst_78 : f32 to vector<4x369xf32>
    %172 = arith.addf %170, %171 : vector<4x369xf32>
    %cst_79 = arith.constant 5.000000e-01 : f32
    %173 = vector.broadcast %cst_79 : f32 to vector<4x369xf32>
    %174 = arith.mulf %173, %172 : vector<4x369xf32>
    %175 = arith.mulf %167, %174 : vector<4x369xf32>
    %c0_80 = arith.constant 0 : index
    %c0_81 = arith.constant 0 : index
    %176 = vector.load %arg6[%c0_80, %c0_81] : memref<16x369xf32, #tpu.memory_space<vmem>>, vector<4x369xf32>
    tpu.vector_store %arg6[%c0_80, %c0_81], %175 {strides = array<i32>} : memref<16x369xf32, #tpu.memory_space<vmem>>, vector<4x369xf32>,
    %177 = vector.extract_strided_slice %159 {offsets = [0, 69], sizes = [4, 369], strides = [1, 1]} : vector<24x484xf32> to vector<4x369xf32>
    %178 = vector.extract_strided_slice %159 {offsets = [4, 70], sizes = [4, 369], strides = [1, 1]} : vector<24x484xf32> to vector<4x369xf32>
    %179 = arith.addf %177, %178 : vector<4x369xf32>
    %180 = vector.extract_strided_slice %159 {offsets = [8, 71], sizes = [4, 369], strides = [1, 1]} : vector<24x484xf32> to vector<4x369xf32>
    %181 = arith.addf %179, %180 : vector<4x369xf32>
    %c0_82 = arith.constant 0 : index
    %c0_83 = arith.constant 0 : index
    %182 = vector.load %arg4[%c0_82, %c0_83] : memref<24x1xf32, #tpu.memory_space<vmem>>, vector<4x1xf32>
    %183 = vector.broadcast %182 : vector<4x1xf32> to vector<4x369xf32>
    %184 = arith.addf %181, %183 : vector<4x369xf32>
    %cst_84 = arith.constant 5.000000e-01 : f32
    %185 = vector.broadcast %cst_84 : f32 to vector<4x369xf32>
    %186 = arith.mulf %185, %184 : vector<4x369xf32>
    %187 = math.tanh %186 : vector<4x369xf32>
    %cst_85 = arith.constant 1.000000e+00 : f32
    %188 = vector.broadcast %cst_85 : f32 to vector<4x369xf32>
    %189 = arith.addf %187, %188 : vector<4x369xf32>
    %cst_86 = arith.constant 5.000000e-01 : f32
    %190 = vector.broadcast %cst_86 : f32 to vector<4x369xf32>
    %191 = arith.mulf %190, %189 : vector<4x369xf32>
    %192 = arith.mulf %184, %191 : vector<4x369xf32>
    %c4_87 = arith.constant 4 : index
    %c0_88 = arith.constant 0 : index
    %193 = vector.load %arg6[%c4_87, %c0_88] : memref<16x369xf32, #tpu.memory_space<vmem>>, vector<4x369xf32>
    tpu.vector_store %arg6[%c4_87, %c0_88], %192 {strides = array<i32>} : memref<16x369xf32, #tpu.memory_space<vmem>>, vector<4x369xf32>,
    %194 = vector.extract_strided_slice %159 {offsets = [12, 3], sizes = [4, 369], strides = [1, 1]} : vector<24x484xf32> to vector<4x369xf32>
    %195 = vector.extract_strided_slice %159 {offsets = [16, 25], sizes = [4, 369], strides = [1, 1]} : vector<24x484xf32> to vector<4x369xf32>
    %196 = arith.addf %194, %195 : vector<4x369xf32>
    %197 = vector.extract_strided_slice %159 {offsets = [20, 47], sizes = [4, 369], strides = [1, 1]} : vector<24x484xf32> to vector<4x369xf32>
    %198 = arith.addf %196, %197 : vector<4x369xf32>
    %c4_89 = arith.constant 4 : index
    %c0_90 = arith.constant 0 : index
    %199 = vector.load %arg4[%c4_89, %c0_90] : memref<24x1xf32, #tpu.memory_space<vmem>>, vector<4x1xf32>
    %200 = vector.broadcast %199 : vector<4x1xf32> to vector<4x369xf32>
    %201 = arith.addf %198, %200 : vector<4x369xf32>
    %cst_91 = arith.constant 5.000000e-01 : f32
    %202 = vector.broadcast %cst_91 : f32 to vector<4x369xf32>
    %203 = arith.mulf %202, %201 : vector<4x369xf32>
    %204 = math.tanh %203 : vector<4x369xf32>
    %cst_92 = arith.constant 1.000000e+00 : f32
    %205 = vector.broadcast %cst_92 : f32 to vector<4x369xf32>
    %206 = arith.addf %204, %205 : vector<4x369xf32>
    %cst_93 = arith.constant 5.000000e-01 : f32
    %207 = vector.broadcast %cst_93 : f32 to vector<4x369xf32>
    %208 = arith.mulf %207, %206 : vector<4x369xf32>
    %209 = arith.mulf %201, %208 : vector<4x369xf32>
    %c8_94 = arith.constant 8 : index
    %c0_95 = arith.constant 0 : index
    %210 = vector.load %arg6[%c8_94, %c0_95] : memref<16x369xf32, #tpu.memory_space<vmem>>, vector<4x369xf32>
    tpu.vector_store %arg6[%c8_94, %c0_95], %209 {strides = array<i32>} : memref<16x369xf32, #tpu.memory_space<vmem>>, vector<4x369xf32>,
    %211 = vector.extract_strided_slice %159 {offsets = [12, 68], sizes = [4, 369], strides = [1, 1]} : vector<24x484xf32> to vector<4x369xf32>
    %212 = vector.extract_strided_slice %159 {offsets = [16, 90], sizes = [4, 369], strides = [1, 1]} : vector<24x484xf32> to vector<4x369xf32>
    %213 = arith.addf %211, %212 : vector<4x369xf32>
    %214 = vector.extract_strided_slice %159 {offsets = [20, 112], sizes = [4, 369], strides = [1, 1]} : vector<24x484xf32> to vector<4x369xf32>
    %215 = arith.addf %213, %214 : vector<4x369xf32>
    %c4_96 = arith.constant 4 : index
    %c0_97 = arith.constant 0 : index
    %216 = vector.load %arg4[%c4_96, %c0_97] : memref<24x1xf32, #tpu.memory_space<vmem>>, vector<4x1xf32>
    %217 = vector.broadcast %216 : vector<4x1xf32> to vector<4x369xf32>
    %218 = arith.addf %215, %217 : vector<4x369xf32>
    %cst_98 = arith.constant 5.000000e-01 : f32
    %219 = vector.broadcast %cst_98 : f32 to vector<4x369xf32>
    %220 = arith.mulf %219, %218 : vector<4x369xf32>
    %221 = math.tanh %220 : vector<4x369xf32>
    %cst_99 = arith.constant 1.000000e+00 : f32
    %222 = vector.broadcast %cst_99 : f32 to vector<4x369xf32>
    %223 = arith.addf %221, %222 : vector<4x369xf32>
    %cst_100 = arith.constant 5.000000e-01 : f32
    %224 = vector.broadcast %cst_100 : f32 to vector<4x369xf32>
    %225 = arith.mulf %224, %223 : vector<4x369xf32>
    %226 = arith.mulf %218, %225 : vector<4x369xf32>
    %c12_101 = arith.constant 12 : index
    %c0_102 = arith.constant 0 : index
    %227 = vector.load %arg6[%c12_101, %c0_102] : memref<16x369xf32, #tpu.memory_space<vmem>>, vector<4x369xf32>
    tpu.vector_store %arg6[%c12_101, %c0_102], %226 {strides = array<i32>} : memref<16x369xf32, #tpu.memory_space<vmem>>, vector<4x369xf32>,
    %c0_103 = arith.constant 0 : index
    %c0_104 = arith.constant 0 : index
    %228 = vector.load %arg6[%c0_103, %c0_104] : memref<16x369xf32, #tpu.memory_space<vmem>>, vector<16x369xf32>
    %cst_105 = arith.constant dense<0.000000e+00> : vector<64x369xf32>
    %229 = tpu.matmul %1, %228, %cst_105 {dimension_numbers = #tpu.dot_dimension_numbers<[1], [0], [0], [1], [0, 0, 1, 1], [], []>} : vector<64x16xf32>, vector<16x369xf32>, vector<64x369xf32> -> vector<64x369xf32>
    %230 = vector.extract_strided_slice %229 {offsets = [0, 0], sizes = [16, 346], strides = [1, 1]} : vector<64x369xf32> to vector<16x346xf32>
    %231 = vector.extract_strided_slice %229 {offsets = [16, 1], sizes = [16, 346], strides = [1, 1]} : vector<64x369xf32> to vector<16x346xf32>
    %232 = arith.addf %230, %231 : vector<16x346xf32>
    %233 = vector.extract_strided_slice %229 {offsets = [32, 22], sizes = [16, 346], strides = [1, 1]} : vector<64x369xf32> to vector<16x346xf32>
    %234 = arith.addf %232, %233 : vector<16x346xf32>
    %235 = vector.extract_strided_slice %229 {offsets = [48, 23], sizes = [16, 346], strides = [1, 1]} : vector<64x369xf32> to vector<16x346xf32>
    %236 = arith.addf %234, %235 : vector<16x346xf32>
    %c8_106 = arith.constant 8 : index
    %c0_107 = arith.constant 0 : index
    %237 = vector.load %arg4[%c8_106, %c0_107] : memref<24x1xf32, #tpu.memory_space<vmem>>, vector<16x1xf32>
    %238 = vector.broadcast %237 : vector<16x1xf32> to vector<16x346xf32>
    %239 = arith.addf %236, %238 : vector<16x346xf32>
    %cst_108 = arith.constant 5.000000e-01 : f32
    %240 = vector.broadcast %cst_108 : f32 to vector<16x346xf32>
    %241 = arith.mulf %240, %239 : vector<16x346xf32>
    %242 = math.tanh %241 : vector<16x346xf32>
    %cst_109 = arith.constant 1.000000e+00 : f32
    %243 = vector.broadcast %cst_109 : f32 to vector<16x346xf32>
    %244 = arith.addf %242, %243 : vector<16x346xf32>
    %cst_110 = arith.constant 5.000000e-01 : f32
    %245 = vector.broadcast %cst_110 : f32 to vector<16x346xf32>
    %246 = arith.mulf %245, %244 : vector<16x346xf32>
    %247 = arith.mulf %239, %246 : vector<16x346xf32>
    %248 = vector.extract_strided_slice %247 {offsets = [0, 0], sizes = [16, 16], strides = [1, 1]} : vector<16x346xf32> to vector<16x16xf32>
    %c1_111 = arith.constant 1 : index
    %c0_112 = arith.constant 0 : index
    %c0_113 = arith.constant 0 : index
    %249 = vector.load %arg5[%c1_111, %c0_112, %c0_113] : memref<2x16x256xf32, #tpu.memory_space<vmem>>, vector<1x16x16xf32>
    %250 = vector.shape_cast %249 : vector<1x16x16xf32> to vector<16x16xf32>
    %251 = vector.shape_cast %248 : vector<16x16xf32> to vector<1x16x16xf32>
    tpu.vector_store %arg5[%c1_111, %c0_112, %c0_113], %251 {strides = array<i32>} : memref<2x16x256xf32, #tpu.memory_space<vmem>>, vector<1x16x16xf32>,
    %252 = vector.extract_strided_slice %247 {offsets = [0, 22], sizes = [16, 16], strides = [1, 1]} : vector<16x346xf32> to vector<16x16xf32>
    %c1_114 = arith.constant 1 : index
    %c0_115 = arith.constant 0 : index
    %c16_116 = arith.constant 16 : index
    %253 = vector.load %arg5[%c1_114, %c0_115, %c16_116] : memref<2x16x256xf32, #tpu.memory_space<vmem>>, vector<1x16x16xf32>
    %254 = vector.shape_cast %253 : vector<1x16x16xf32> to vector<16x16xf32>
    %255 = vector.shape_cast %252 : vector<16x16xf32> to vector<1x16x16xf32>
    tpu.vector_store %arg5[%c1_114, %c0_115, %c16_116], %255 {strides = array<i32>} : memref<2x16x256xf32, #tpu.memory_space<vmem>>, vector<1x16x16xf32>,
    %256 = vector.extract_strided_slice %247 {offsets = [0, 44], sizes = [16, 16], strides = [1, 1]} : vector<16x346xf32> to vector<16x16xf32>
    %c1_117 = arith.constant 1 : index
    %c0_118 = arith.constant 0 : index
    %c32_119 = arith.constant 32 : index
    %257 = vector.load %arg5[%c1_117, %c0_118, %c32_119] : memref<2x16x256xf32, #tpu.memory_space<vmem>>, vector<1x16x16xf32>
    %258 = vector.shape_cast %257 : vector<1x16x16xf32> to vector<16x16xf32>
    %259 = vector.shape_cast %256 : vector<16x16xf32> to vector<1x16x16xf32>
    tpu.vector_store %arg5[%c1_117, %c0_118, %c32_119], %259 {strides = array<i32>} : memref<2x16x256xf32, #tpu.memory_space<vmem>>, vector<1x16x16xf32>,
    %260 = vector.extract_strided_slice %247 {offsets = [0, 66], sizes = [16, 16], strides = [1, 1]} : vector<16x346xf32> to vector<16x16xf32>
    %c1_120 = arith.constant 1 : index
    %c0_121 = arith.constant 0 : index
    %c48_122 = arith.constant 48 : index
    %261 = vector.load %arg5[%c1_120, %c0_121, %c48_122] : memref<2x16x256xf32, #tpu.memory_space<vmem>>, vector<1x16x16xf32>
    %262 = vector.shape_cast %261 : vector<1x16x16xf32> to vector<16x16xf32>
    %263 = vector.shape_cast %260 : vector<16x16xf32> to vector<1x16x16xf32>
    tpu.vector_store %arg5[%c1_120, %c0_121, %c48_122], %263 {strides = array<i32>} : memref<2x16x256xf32, #tpu.memory_space<vmem>>, vector<1x16x16xf32>,
    %264 = vector.extract_strided_slice %247 {offsets = [0, 88], sizes = [16, 16], strides = [1, 1]} : vector<16x346xf32> to vector<16x16xf32>
    %c1_123 = arith.constant 1 : index
    %c0_124 = arith.constant 0 : index
    %c64_125 = arith.constant 64 : index
    %265 = vector.load %arg5[%c1_123, %c0_124, %c64_125] : memref<2x16x256xf32, #tpu.memory_space<vmem>>, vector<1x16x16xf32>
    %266 = vector.shape_cast %265 : vector<1x16x16xf32> to vector<16x16xf32>
    %267 = vector.shape_cast %264 : vector<16x16xf32> to vector<1x16x16xf32>
    tpu.vector_store %arg5[%c1_123, %c0_124, %c64_125], %267 {strides = array<i32>} : memref<2x16x256xf32, #tpu.memory_space<vmem>>, vector<1x16x16xf32>,
    %268 = vector.extract_strided_slice %247 {offsets = [0, 110], sizes = [16, 16], strides = [1, 1]} : vector<16x346xf32> to vector<16x16xf32>
    %c1_126 = arith.constant 1 : index
    %c0_127 = arith.constant 0 : index
    %c80_128 = arith.constant 80 : index
    %269 = vector.load %arg5[%c1_126, %c0_127, %c80_128] : memref<2x16x256xf32, #tpu.memory_space<vmem>>, vector<1x16x16xf32>
    %270 = vector.shape_cast %269 : vector<1x16x16xf32> to vector<16x16xf32>
    %271 = vector.shape_cast %268 : vector<16x16xf32> to vector<1x16x16xf32>
    tpu.vector_store %arg5[%c1_126, %c0_127, %c80_128], %271 {strides = array<i32>} : memref<2x16x256xf32, #tpu.memory_space<vmem>>, vector<1x16x16xf32>,
    %272 = vector.extract_strided_slice %247 {offsets = [0, 132], sizes = [16, 16], strides = [1, 1]} : vector<16x346xf32> to vector<16x16xf32>
    %c1_129 = arith.constant 1 : index
    %c0_130 = arith.constant 0 : index
    %c96_131 = arith.constant 96 : index
    %273 = vector.load %arg5[%c1_129, %c0_130, %c96_131] : memref<2x16x256xf32, #tpu.memory_space<vmem>>, vector<1x16x16xf32>
    %274 = vector.shape_cast %273 : vector<1x16x16xf32> to vector<16x16xf32>
    %275 = vector.shape_cast %272 : vector<16x16xf32> to vector<1x16x16xf32>
    tpu.vector_store %arg5[%c1_129, %c0_130, %c96_131], %275 {strides = array<i32>} : memref<2x16x256xf32, #tpu.memory_space<vmem>>, vector<1x16x16xf32>,
    %276 = vector.extract_strided_slice %247 {offsets = [0, 154], sizes = [16, 16], strides = [1, 1]} : vector<16x346xf32> to vector<16x16xf32>
    %c1_132 = arith.constant 1 : index
    %c0_133 = arith.constant 0 : index
    %c112_134 = arith.constant 112 : index
    %277 = vector.load %arg5[%c1_132, %c0_133, %c112_134] : memref<2x16x256xf32, #tpu.memory_space<vmem>>, vector<1x16x16xf32>
    %278 = vector.shape_cast %277 : vector<1x16x16xf32> to vector<16x16xf32>
    %279 = vector.shape_cast %276 : vector<16x16xf32> to vector<1x16x16xf32>
    tpu.vector_store %arg5[%c1_132, %c0_133, %c112_134], %279 {strides = array<i32>} : memref<2x16x256xf32, #tpu.memory_space<vmem>>, vector<1x16x16xf32>,
    %280 = vector.extract_strided_slice %247 {offsets = [0, 176], sizes = [16, 16], strides = [1, 1]} : vector<16x346xf32> to vector<16x16xf32>
    %c1_135 = arith.constant 1 : index
    %c0_136 = arith.constant 0 : index
    %c128_137 = arith.constant 128 : index
    %281 = vector.load %arg5[%c1_135, %c0_136, %c128_137] : memref<2x16x256xf32, #tpu.memory_space<vmem>>, vector<1x16x16xf32>
    %282 = vector.shape_cast %281 : vector<1x16x16xf32> to vector<16x16xf32>
    %283 = vector.shape_cast %280 : vector<16x16xf32> to vector<1x16x16xf32>
    tpu.vector_store %arg5[%c1_135, %c0_136, %c128_137], %283 {strides = array<i32>} : memref<2x16x256xf32, #tpu.memory_space<vmem>>, vector<1x16x16xf32>,
    %284 = vector.extract_strided_slice %247 {offsets = [0, 198], sizes = [16, 16], strides = [1, 1]} : vector<16x346xf32> to vector<16x16xf32>
    %c1_138 = arith.constant 1 : index
    %c0_139 = arith.constant 0 : index
    %c144_140 = arith.constant 144 : index
    %285 = vector.load %arg5[%c1_138, %c0_139, %c144_140] : memref<2x16x256xf32, #tpu.memory_space<vmem>>, vector<1x16x16xf32>
    %286 = vector.shape_cast %285 : vector<1x16x16xf32> to vector<16x16xf32>
    %287 = vector.shape_cast %284 : vector<16x16xf32> to vector<1x16x16xf32>
    tpu.vector_store %arg5[%c1_138, %c0_139, %c144_140], %287 {strides = array<i32>} : memref<2x16x256xf32, #tpu.memory_space<vmem>>, vector<1x16x16xf32>,
    %288 = vector.extract_strided_slice %247 {offsets = [0, 220], sizes = [16, 16], strides = [1, 1]} : vector<16x346xf32> to vector<16x16xf32>
    %c1_141 = arith.constant 1 : index
    %c0_142 = arith.constant 0 : index
    %c160_143 = arith.constant 160 : index
    %289 = vector.load %arg5[%c1_141, %c0_142, %c160_143] : memref<2x16x256xf32, #tpu.memory_space<vmem>>, vector<1x16x16xf32>
    %290 = vector.shape_cast %289 : vector<1x16x16xf32> to vector<16x16xf32>
    %291 = vector.shape_cast %288 : vector<16x16xf32> to vector<1x16x16xf32>
    tpu.vector_store %arg5[%c1_141, %c0_142, %c160_143], %291 {strides = array<i32>} : memref<2x16x256xf32, #tpu.memory_space<vmem>>, vector<1x16x16xf32>,
    %292 = vector.extract_strided_slice %247 {offsets = [0, 242], sizes = [16, 16], strides = [1, 1]} : vector<16x346xf32> to vector<16x16xf32>
    %c1_144 = arith.constant 1 : index
    %c0_145 = arith.constant 0 : index
    %c176_146 = arith.constant 176 : index
    %293 = vector.load %arg5[%c1_144, %c0_145, %c176_146] : memref<2x16x256xf32, #tpu.memory_space<vmem>>, vector<1x16x16xf32>
    %294 = vector.shape_cast %293 : vector<1x16x16xf32> to vector<16x16xf32>
    %295 = vector.shape_cast %292 : vector<16x16xf32> to vector<1x16x16xf32>
    tpu.vector_store %arg5[%c1_144, %c0_145, %c176_146], %295 {strides = array<i32>} : memref<2x16x256xf32, #tpu.memory_space<vmem>>, vector<1x16x16xf32>,
    %296 = vector.extract_strided_slice %247 {offsets = [0, 264], sizes = [16, 16], strides = [1, 1]} : vector<16x346xf32> to vector<16x16xf32>
    %c1_147 = arith.constant 1 : index
    %c0_148 = arith.constant 0 : index
    %c192_149 = arith.constant 192 : index
    %297 = vector.load %arg5[%c1_147, %c0_148, %c192_149] : memref<2x16x256xf32, #tpu.memory_space<vmem>>, vector<1x16x16xf32>
    %298 = vector.shape_cast %297 : vector<1x16x16xf32> to vector<16x16xf32>
    %299 = vector.shape_cast %296 : vector<16x16xf32> to vector<1x16x16xf32>
    tpu.vector_store %arg5[%c1_147, %c0_148, %c192_149], %299 {strides = array<i32>} : memref<2x16x256xf32, #tpu.memory_space<vmem>>, vector<1x16x16xf32>,
    %300 = vector.extract_strided_slice %247 {offsets = [0, 286], sizes = [16, 16], strides = [1, 1]} : vector<16x346xf32> to vector<16x16xf32>
    %c1_150 = arith.constant 1 : index
    %c0_151 = arith.constant 0 : index
    %c208_152 = arith.constant 208 : index
    %301 = vector.load %arg5[%c1_150, %c0_151, %c208_152] : memref<2x16x256xf32, #tpu.memory_space<vmem>>, vector<1x16x16xf32>
    %302 = vector.shape_cast %301 : vector<1x16x16xf32> to vector<16x16xf32>
    %303 = vector.shape_cast %300 : vector<16x16xf32> to vector<1x16x16xf32>
    tpu.vector_store %arg5[%c1_150, %c0_151, %c208_152], %303 {strides = array<i32>} : memref<2x16x256xf32, #tpu.memory_space<vmem>>, vector<1x16x16xf32>,
    %304 = vector.extract_strided_slice %247 {offsets = [0, 308], sizes = [16, 16], strides = [1, 1]} : vector<16x346xf32> to vector<16x16xf32>
    %c1_153 = arith.constant 1 : index
    %c0_154 = arith.constant 0 : index
    %c224_155 = arith.constant 224 : index
    %305 = vector.load %arg5[%c1_153, %c0_154, %c224_155] : memref<2x16x256xf32, #tpu.memory_space<vmem>>, vector<1x16x16xf32>
    %306 = vector.shape_cast %305 : vector<1x16x16xf32> to vector<16x16xf32>
    %307 = vector.shape_cast %304 : vector<16x16xf32> to vector<1x16x16xf32>
    tpu.vector_store %arg5[%c1_153, %c0_154, %c224_155], %307 {strides = array<i32>} : memref<2x16x256xf32, #tpu.memory_space<vmem>>, vector<1x16x16xf32>,
    %308 = vector.extract_strided_slice %247 {offsets = [0, 330], sizes = [16, 16], strides = [1, 1]} : vector<16x346xf32> to vector<16x16xf32>
    %c1_156 = arith.constant 1 : index
    %c0_157 = arith.constant 0 : index
    %c240_158 = arith.constant 240 : index
    %309 = vector.load %arg5[%c1_156, %c0_157, %c240_158] : memref<2x16x256xf32, #tpu.memory_space<vmem>>, vector<1x16x16xf32>
    %310 = vector.shape_cast %309 : vector<1x16x16xf32> to vector<16x16xf32>
    %311 = vector.shape_cast %308 : vector<16x16xf32> to vector<1x16x16xf32>
    tpu.vector_store %arg5[%c1_156, %c0_157, %c240_158], %311 {strides = array<i32>} : memref<2x16x256xf32, #tpu.memory_space<vmem>>, vector<1x16x16xf32>,
    return
  }
  func.func @transform_0(%arg0: i32) -> (i32, i32, i32) {
    %c0_i32 = arith.constant 0 : i32
    %c0_i32_0 = arith.constant 0 : i32
    %c0_i32_1 = arith.constant 0 : i32
    %c0_i32_2 = arith.constant 0 : i32
    return %c0_i32, %c0_i32_0, %c0_i32_1 : i32, i32, i32
  }
  func.func @transform_1(%arg0: i32) -> (i32, i32) {
    %c0_i32 = arith.constant 0 : i32
    %c0_i32_0 = arith.constant 0 : i32
    %c0_i32_1 = arith.constant 0 : i32
    return %c0_i32, %c0_i32_0 : i32, i32
  }
  func.func @transform_2(%arg0: i32) -> (i32, i32) {
    %c0_i32 = arith.constant 0 : i32
    %c0_i32_0 = arith.constant 0 : i32
    %c0_i32_1 = arith.constant 0 : i32
    return %c0_i32, %c0_i32_0 : i32, i32
  }
  func.func @transform_3(%arg0: i32) -> (i32, i32) {
    %c0_i32 = arith.constant 0 : i32
    %c0_i32_0 = arith.constant 0 : i32
    %c0_i32_1 = arith.constant 0 : i32
    return %c0_i32, %c0_i32_0 : i32, i32
  }
  func.func @transform_4(%arg0: i32) -> (i32, i32, i32) {
    %c0_i32 = arith.constant 0 : i32
    %c0_i32_0 = arith.constant 0 : i32
    %c0_i32_1 = arith.constant 0 : i32
    %c0_i32_2 = arith.constant 0 : i32
    return %c0_i32, %c0_i32_0, %c0_i32_1 : i32, i32, i32
  }
}

</mosaic_0001>

<bundles_post_ra>
// kernel: pconv_forward.1
= control target key start
LH: loop header
LB: loop body
LE: loop exit
PB: predicated region body
PF: predicated region fallthrough
CT: control target
= control target key end

     0   :  { %vm44_vm0 = vcmask 1043456   ;;  %v2333_v1 = vmov 0.0   ;;  %v2334_v5 = vmov 0   ;;  %vm34_vm1 = vcmask 31744   ;;  %s2336_s7 = smov 126   ;;  %s2337_s8 = smov 106   ;;  %s3503_s0 = inlined_call_operand.vmem [shape: f32[2,4,484], index: 0, kind: input, shape index: {}]   ;;  %s3504_s1 = inlined_call_operand.vmem [shape: f32[24,4], index: 1, kind: input, shape index: {}]   ;;  %s3505_s3 = inlined_call_operand.vmem [shape: f32[24,1], index: 3, kind: input, shape index: {}]   ;;  %s3506_s2 = inlined_call_operand.vmem [shape: f32[64,16], index: 2, kind: input, shape index: {}]   ;;  %s3507_s4 = inlined_call_operand.vmem [shape: f32[2,16,256], index: 4, kind: output, shape index: {}]  }
   0x1   :  { %v28_v0 = vld [vmem:[%s3503_s0] sm:$0xff]  ;;  %129 = vmatprep.mubr.f32.mxu1 %v2333_v1  ;;  %v29_v2 = vld [vmem:[%s3503_s0 + $0x8] sm:$0xff]  ;;  %117 = vmatprep.mubr.f32.mxu0 %v2333_v1  ;;  %v2397_v7 = vld [vmem:[%s3504_s1 + $0x10] sm:$0xff]  ;;  %s2338_s9 = smov 84   ;;  %vm235_vm2 = vcmask 1039360   ;;  %vm259_vm3 = vcmask 1031168  }
   0x2   :  { %v32_v3 = vcombine.high %v28_v0, %v28_v0  ;;  %v33_v4 = vcombine.high %v29_v2, %v29_v2  ;;  %2244 = vset.pattern.permute.xlu1 %v2334_v5  ;;  %2243 = vset.pattern.permute.xlu0 %v2334_v5  ;;  %v474_v6 = vld [vmem:[%s3505_s3 + $0x4] sm:$0xf]  ;;  %v271_v9 = vld [vmem:[%s3505_s3] sm:$0xf]  ;;  %v2431_v12 = vld [vmem:[%s3504_s1 + $0x8] sm:$0xff]  ;;  %vm397_vm4 = vcmask 867328  }
   0x3   :  { %477 = vperm.xlu1 %2244, %v474_v6   ;;  %v424_v8 = vld [vmem:[%s3505_s3 + $0x4] sm:$0xf]  ;;  %v324_v11 = vld [vmem:[%s3505_s3] sm:$0xf]  ;;  %vm313_vm5 = vcmask 687104   ;;  %s2339_s10 = smov 59  }
   0x4   :  { %2216 = vmatprep.subr.msk.mxu1 %vm44_vm0, %v32_v3  ;;  %2062 = vmatprep.subr.msk.mxu0 %vm44_vm0, %v32_v3  ;;  %v2417_v10 = vld [vmem:[%s3504_s1] sm:$0xff]  ;;  %s2335_s1 = smov 127   ;;  %s2340_s11 = smov 60   ;;  %vm533_vm6 = vcmask 130048   ;;  %vm322_vm7 = vcmask 920576   ;;  %vm370_vm8 = vcmask 482304  }
   0x5   :  { %2217 = vmatpush1.msk.msra.mxu1 %vm44_vm0, %v28_v0  ;;  %2063 = vmatpush1.msk.msra.mxu0 %vm44_vm0, %v28_v0  ;;  %s2341_s12 = smov 125   ;;  %vm379_vm9 = vcmask 924676   ;;  %vm517_vm10 = vcmask 490496   ;;  %vm461_vm11 = vcmask 1022976   ;;  %vm862_vm12 = vcmask 859136   ;;  %s2344_s23 = smov 116  }
   0x6   :  { %2066 = vmatmul.mubr.msk.f32.vlgmr.msra.gmra.mrb[0].mxu1 %vm34_vm1, %v2397_v7  ;;  %2067 = vmatprep.subr.msk.mxu1 %vm44_vm0, %v33_v4  ;;  %s2345_s24 = smov 110   ;;  %s2346_s25 = smov 104   ;;  %vm937_vm13 = vcmask 261248   ;;  %vm946_vm14 = vcmask 392448   ;;  %vm955_vm15 = vcmask 523648  }
   0x7   :  { %2068 = vmatpush1.msk.msra.mxu1 %vm44_vm0, %v29_v2  ;;  %200 = vmatprep.mubr.f32.mxu1 %v2333_v1  ;;  %s2347_s26 = smov 98   ;;  %s2348_s27 = smov 92  }
   0x8   :  { %2064 = vmatmul.mubr.msk.f32.vlgmr.msra.gmra.mrb[0].mxu0 %vm34_vm1, %v2417_v10  ;;  %427 = vperm.xlu0 %2243, %v424_v8   ;;  %s2349_s28 = smov 86   ;;  %s2350_s29 = smov 80  }
   0x9   :  { %123 = vmatprep.mubr.f32.mxu0 %v2333_v1  ;;  %274 = vperm.xlu1 %2244, %v271_v9   ;;  %s2351_s30 = smov 74   ;;  %s2355_s5 = smov 50  }
   0xa   :  { %2069 = vmatmul.mubr.msk.f32.vlgmr.msra.gmra.mrb[2].mxu1 %vm34_vm1, %v2417_v10  ;;  %s2356_s6 = smov 44   ;;  %s2357_s13 = smov 38  }
   0xb   :  { %206 = vmatprep.mubr.f32.mxu1 %v2333_v1 }
   0xc   :  { %2065 = vmatmul.mubr.msk.f32.gmra.mrb[2].mxu0 %vm34_vm1, %v2431_v12  ;;  %327 = vperm.xlu0 %2243, %v324_v11  }
   0xd   :  { %622 = vmatprep.mubr.f32.mxu0 %v2333_v1 }
   0xe   :  { %2070 = vmatmul.mubr.msk.f32.gmra.mrb[4].mxu1 %vm34_vm1, %v2431_v12 }
   0xf   :  { %212 = vmatprep.mubr.f32.mxu1 %v2333_v1 }
  0x12   :  { %2071 = vmatmul.mubr.msk.f32.gmra.mrb[6].mxu1 %vm34_vm1, %v2397_v7 }
  0x82   :  { %v478_v29 = vpop.permute.xlu1 %477 }
  0x83   :  { %v2483_v58 = vrot.slane %v478_v29, 4 }
  0x87   :  { %v428_v30 = vpop.permute.xlu0 %427 }
  0x88   :  { %v2461_v31 = vpop.permute.xlu1 %274  ;;  %v2487_v61 = vrot.slane %v428_v30, 4 }
  0x8b   :  { %v2463_v32 = vpop.permute.xlu0 %327 }
  0xd9   :  { %v2441_v13 = vpop.f32.mrb[0].mxu1 }
  0xda   :  { %v2443_v14 = vpop.f32.mrb[1].mxu1 }
  0xdb   :  { %v2453_v25 = vpop.f32.mrb[0].mxu0 }
  0xdc   :  { %v2455_v26 = vpop.f32.mrb[1].mxu0 }
  0xdd   :  { %v202_v15 = vpop.f32.mrb[2].mxu1 }
  0xde   :  { %v225_v16 = vrot.slane %v202_v15, 4  ;;  %v204_v17 = vpop.f32.mrb[3].mxu1 }
  0xdf   :  { %v226_v18 = vrot.slane %v204_v17, 4  ;;  %v2457_v27 = vpop.f32.mrb[2].mxu0 }
  0xe0   :  { %231 = vrot.lane.b32.xlu1 %v225_v16, %s2335_s1  ;;  %v2459_v28 = vpop.f32.mrb[3].mxu0 }
  0xe1   :  { %233 = vrot.lane.b32.xlu0 %v226_v18, %s2335_s1  ;;  %v208_v19 = vpop.f32.mrb[4].mxu1 }
  0xe2   :  { %v210_v20 = vpop.f32.mrb[5].mxu1 }
  0xe4   :  { %257 = vrot.lane.b32.xlu1 %v210_v20, %s2336_s7 }
  0xe5   :  { %255 = vrot.lane.b32.xlu0 %v208_v19, %s2336_s7  ;;  %v214_v21 = vpop.f32.mrb[6].mxu1 }
  0xe6   :  { %v387_v22 = vrot.slane %v214_v21, 4  ;;  %v216_v23 = vpop.f32.mrb[7].mxu1 }
  0xe7   :  { %v388_v24 = vrot.slane %v216_v23, 4 }
  0xe9   :  { %393 = vrot.lane.b32.xlu0 %v387_v22, %s2337_s8  ;;  %395 = vrot.lane.b32.xlu1 %v388_v24, %s2337_s8 }
  0xed   :  { %411 = vrot.lane.b32.xlu0 %v214_v21, %s2338_s9  ;;  %413 = vrot.lane.b32.xlu1 %v216_v23, %s2338_s9 }
 0x152   :  { %v2465_v33 = vpop.permute.xlu1 %231 }
 0x153   :  { %v234_v34 = vpop.permute.xlu0 %233 }
 0x154   :  { %v238_v35 = vsel %vm235_vm2, %v2465_v33, %v234_v34  ;;  %v246_v36 = vadd.f32 %v234_v34, %v204_v17 }
 0x155   :  { %v245_v38 = vadd.f32 %v238_v35, %v202_v15 }
 0x156   :  { %v258_v37 = vpop.permute.xlu1 %257 }
 0x157   :  { %v270_v39 = vadd.f32 %v258_v37, %v246_v36  ;;  %v2469_v40 = vpop.permute.xlu0 %255 }
 0x158   :  { %v262_v41 = vsel %vm259_vm3, %v2469_v40, %v258_v37 }
 0x159   :  { %v280_v42 = vadd.f32 %v2461_v31, %v270_v39  ;;  %v333_v43 = vadd.f32 %v2463_v32, %v270_v39  ;;  %v269_v44 = vadd.f32 %v262_v41, %v245_v38 }
 0x15b   :  { %v284_v45 = vmul.f32 0.5, %v280_v42  ;;  %v337_v46 = vmul.f32 0.5, %v333_v43  ;;  %v2475_v47 = vpop.permute.xlu0 %393  ;;  %v396_v48 = vpop.permute.xlu1 %395  ;;  %v279_v49 = vadd.f32 %v2461_v31, %v269_v44  ;;  %v332_v50 = vadd.f32 %v2463_v32, %v269_v44 }
 0x15c   :  { %v400_v51 = vsel %vm397_vm4, %v2475_v47, %v396_v48  ;;  %v471_v54 = vadd.f32 %v396_v48, %v210_v20 }
 0x15d   :  { %2249 = vtanh.f32 %v284_v45  ;;  %v283_v52 = vmul.f32 0.5, %v279_v49  ;;  %v336_v53 = vmul.f32 0.5, %v332_v50  ;;  %v406_v55 = vadd.f32 %v400_v51, %v208_v19 }
 0x15e   :  { %2251 = vtanh.f32 %v337_v46 }
 0x15f   :  { %v2481_v56 = vpop.permute.xlu0 %411  ;;  %v414_v57 = vpop.permute.xlu1 %413  ;;  %2253 = vtanh.f32 %v283_v52  ;;  %v223_v52 = vrot.slane %v2453_v25, 4 }
 0x160   :  { %v417_v59 = vsel %vm313_vm5, %v2481_v56, %v414_v57  ;;  %v473_v60 = vadd.f32 %v471_v54, %v414_v57  ;;  %2255 = vtanh.f32 %v336_v53  ;;  %v2505_v53 = vld [vmem:[%s3506_s2] sm:$0xff]  ;;  %v386_v54 = vrot.slane %v2443_v14, 4 }
 0x161   :  { %v423_v62 = vadd.f32 %v417_v59, %v406_v55  ;;  %2172 = vmatprep.mubr.msk.f32.mxu1 %vm533_vm6, %v2505_v53  ;;  %v385_v55 = vrot.slane %v2441_v13, 4  ;;  %v1448_v57 = vld [vmem:[%s3505_s3 + $0x4] sm:$0xf] }
 0x162   :  { %v484_v63 = vadd.f32 %v2483_v58, %v473_v60  ;;  %v1497_v59 = vld [vmem:[%s3505_s3 + $0x4] sm:$0xf]  ;;  %v1351_v60 = vld [vmem:[%s3505_s3] sm:$0xf] }
 0x163   :  { %v483_v0 = vadd.f32 %v2483_v58, %v423_v62  ;;  %v433_v2 = vadd.f32 %v2487_v61, %v423_v62 }
 0x164   :  { %v488_v3 = vmul.f32 0.5, %v484_v63 }
 0x165   :  { %v487_v4 = vmul.f32 0.5, %v483_v0  ;;  %v436_v5 = vmul.f32 0.5, %v433_v2 }
 0x166   :  { %2257 = vtanh.f32 %v488_v3 }
 0x167   :  { %v2250_v6 = vpop.eup %2249  ;;  %2259 = vtanh.f32 %v487_v4 }
 0x168   :  { %v2252_v8 = vpop.eup %2251  ;;  %v292_v9 = vadd.f32 1.0, %v2250_v6  ;;  %2261 = vtanh.f32 %v436_v5 }
 0x169   :  { %v2254_v11 = vpop.eup %2253  ;;  %v345_v15 = vadd.f32 1.0, %v2252_v8 }
 0x16a   :  { %v2256_v16 = vpop.eup %2255  ;;  %v296_v17 = vmul.f32 0.5, %v292_v9  ;;  %v291_v18 = vadd.f32 1.0, %v2254_v11  ;;  %v2088_v9 = vld [vmem:[%s3503_s0 + $0x10] sm:$0xff] }
 0x16b   :  { %v349_v19 = vmul.f32 0.5, %v345_v15  ;;  %v344_v20 = vadd.f32 1.0, %v2256_v16 }
 0x16c   :  { %v300_v21 = vmul.f32 %v296_v17, %v280_v42  ;;  %v295_v22 = vmul.f32 0.5, %v291_v18  ;;  %v1074_v17 = vcombine.high %v2088_v9, %v2088_v9  ;;  %v2089_v18 = vld [vmem:[%s3503_s0 + $0x18] sm:$0xff]  ;;  %s2353_s0 = smov 62  }
 0x16d   :  { %v353_v23 = vmul.f32 %v349_v19, %v333_v43  ;;  %v348_v24 = vmul.f32 0.5, %v344_v20  ;;  %v2562_v19 = vld [vmem:[%s3506_s2 + $0x8] sm:$0xff]  ;;  %v2567_v20 = vld [vmem:[%s3506_s2 + $0x10] sm:$0xff] }
 0x16e   :  { %311 = vrot.lane.b32.xlu1 %v300_v21, %s2338_s9  ;;  %v299_v29 = vmul.f32 %v295_v22, %v279_v49  ;;  %v224_v49 = vrot.slane %v2455_v26, 4  ;;  %v1075_v21 = vcombine.high %v2089_v18, %v2089_v18  ;;  %v2577_v22 = vld [vmem:[%s3506_s2 + $0x18] sm:$0xff] }
 0x16f   :  { %v352_v30 = vmul.f32 %v348_v24, %v332_v50  ;;  %v361_v35 = vrot.slane %v353_v23, 4  ;;  %v2583_v23 = vld [vmem:[%s3506_s2 + $0x20] sm:$0xff]  ;;  %v2593_v24 = vld [vmem:[%s3506_s2 + $0x28] sm:$0xff] }
 0x170   :  { %v2258_v34 = vpop.eup %2257  ;;  %309 = vrot.lane.b32.xlu0 %v299_v29, %s2338_s9  ;;  %v2598_v29 = vld [vmem:[%s3506_s2 + $0x30] sm:$0xff] }
 0x171   :  { %v2260_v36 = vpop.eup %2259  ;;  %v496_v37 = vadd.f32 1.0, %v2258_v34  ;;  %v360_v39 = vrot.slane %v352_v30, 4  ;;  %v2607_v30 = vld [vmem:[%s3506_s2 + $0x38] sm:$0xff]  ;;  %s2342_s2 = smov 105  }
 0x172   :  { %v2262_v38 = vpop.eup %2261  ;;  %368 = vrot.lane.b32.xlu1 %v361_v35, %s2339_s10  ;;  %v495_v41 = vadd.f32 1.0, %v2260_v36 }
 0x173   :  { %v500_v42 = vmul.f32 0.5, %v496_v37  ;;  %v442_v44 = vadd.f32 1.0, %v2262_v38 }
 0x174   :  { %366 = vrot.lane.b32.xlu0 %v360_v39, %s2339_s10  ;;  %v499_v43 = vmul.f32 0.5, %v495_v41 }
 0x175   :  { %v504_v45 = vmul.f32 %v500_v42, %v484_v63  ;;  %v445_v46 = vmul.f32 0.5, %v442_v44 }
 0x176   :  { %v503_v48 = vmul.f32 %v499_v43, %v483_v0 }
 0x177   :  { %515 = vrot.lane.b32.xlu1 %v504_v45, %s2340_s11  ;;  %v448_v50 = vmul.f32 %v445_v46, %v433_v2 }
 0x178   :  { %513 = vrot.lane.b32.xlu0 %v503_v48, %s2340_s11 }
 0x179   :  { %v454_v51 = vrot.slane %v448_v50, 4 }
 0x17b   :  { %229 = vrot.lane.b32.xlu1 %v224_v49, %s2335_s1 }
 0x17c   :  { %459 = vrot.lane.b32.xlu0 %v454_v51, %s2341_s12 }
 0x17f   :  { %227 = vrot.lane.b32.xlu1 %v223_v52, %s2335_s1 }
 0x180   :  { %391 = vrot.lane.b32.xlu0 %v386_v54, %s2337_s8 }
 0x183   :  { %253 = vrot.lane.b32.xlu1 %v2459_v28, %s2336_s7 }
 0x184   :  { %389 = vrot.lane.b32.xlu0 %v385_v55, %s2337_s8 }
 0x187   :  { %251 = vrot.lane.b32.xlu1 %v2457_v27, %s2336_s7 }
 0x188   :  { %409 = vrot.lane.b32.xlu0 %v2443_v14, %s2338_s9  ;;  %v1300_v14 = vld [vmem:[%s3505_s3] sm:$0xf] }
 0x18b   :  { %1451 = vperm.xlu1 %2244, %v1448_v57  }
 0x18c   :  { %407 = vrot.lane.b32.xlu0 %v2441_v13, %s2338_s9 }
 0x18f   :  { %1500 = vperm.xlu1 %2244, %v1497_v59  }
 0x190   :  { %1354 = vperm.xlu0 %2243, %v1351_v60  }
 0x193   :  { %1303 = vperm.xlu1 %2244, %v1300_v14  }
 0x1e0   :  { %v312_v62 = vpop.permute.xlu1 %311 }
 0x1e2   :  { %v2534_v63 = vpop.permute.xlu0 %309 }
 0x1e3   :  { %v316_v13 = vsel %vm313_vm5, %v2534_v63, %v312_v62 }
 0x1e4   :  { %323 = vst.msk [vmem:[#allocation2 + $0x10] sm:$0xf] %vm322_vm7, %v316_v13  ;;  %v369_v0 = vpop.permute.xlu1 %368 }
 0x1e6   :  { %v2539_v2 = vpop.permute.xlu0 %366 }
 0x1e7   :  { %v373_v3 = vsel %vm370_vm8, %v2539_v2, %v369_v0 }
 0x1e8   :  { %380 = vst.msk [vmem:[#allocation2 + $0x10] sm:$0xf0] %vm379_vm9, %v373_v3 }
 0x1e9   :  { %v516_v4 = vpop.permute.xlu1 %515 }
 0x1ea   :  { %v2544_v5 = vpop.permute.xlu0 %513 }
 0x1eb   :  { %v520_v6 = vsel %vm517_vm10, %v2544_v5, %v516_v4 }
 0x1ec   :  { %526 = vst.msk [vmem:[#allocation2 + $0x28] sm:$0xf0] %vm379_vm9, %v520_v6 }
 0x1ed   :  { %v230_v34 = vpop.permute.xlu1 %229 }
 0x1ee   :  { %v2549_v8 = vpop.permute.xlu0 %459 }
 0x1ef   :  { %469 = vst.msk [vmem:[#allocation2 + $0x28] sm:$0xf] %vm322_vm7, %v2549_v8  ;;  %v529_v11 = vld [vmem:[#allocation2 + $0x10] sm:$0xff] }
 0x1f2   :  { %v392_v35 = vpop.permute.xlu0 %391 }
 0x1f3   :  { %v399_v45 = vsel %vm397_vm4, %v392_v35, %v2475_v47 }
 0x1f4   :  { %v405_v52 = vadd.f32 %v399_v45, %v2459_v28 }
 0x1f6   :  { %v532_v15 = vld [vmem:[#allocation2 + $0x28] sm:$0xff]  ;;  %v390_v38 = vpop.permute.xlu0 %389 }
 0x1f7   :  { %v2204_v16 = vpack.c.bf16 %v532_v15, %v529_v11  ;;  %v398_v14 = vsel %vm397_vm4, %v390_v38, %v392_v35 }
 0x1f9   :  { %2205 = vmatprep.subr.bf16.mxu1 %v2204_v16 }
 0x1fa   :  { %2207 = vmatpush3.bf16.msra.mxu1 %v2204_v16  ;;  %v410_v43 = vpop.permute.xlu0 %409 }
 0x1fb   :  { %2090 = vmatprep.subr.msk.mxu1 %vm44_vm0, %v1074_v17  ;;  %v416_v50 = vsel %vm313_vm5, %v410_v43, %v2481_v56 }
 0x1fc   :  { %v422_v55 = vadd.f32 %v416_v50, %v405_v52 }
 0x1fd   :  { %2173 = vmatmul.mubr.msk.f32.vlgmr.msra.gmra.mrb[8].mxu1 %vm533_vm6, %v2562_v19 }
 0x1fe   :  { %2175 = vmatprep.mubr.msk.f32.mxu1 %vm533_vm6, %v2567_v20  ;;  %2091 = vmatpush1.msk.msra.mxu1 %vm44_vm0, %v2088_v9  ;;  %v408_v60 = vpop.permute.xlu0 %407  ;;  %v2676_v0 = vadd.f32 %v2487_v61, %v422_v55 }
 0x1ff   :  { %2095 = vmatprep.subr.msk.mxu1 %vm44_vm0, %v1075_v21  ;;  %v415_v3 = vsel %vm313_vm5, %v408_v60, %v410_v43 }
 0x200   :  { %v435_v17 = vmul.f32 0.5, %v2676_v0 }
 0x201   :  { %2176 = vmatmul.mubr.msk.f32.gmra.mrb[10].mxu1 %vm533_vm6, %v2577_v22 }
 0x202   :  { %2178 = vmatprep.mubr.msk.f32.mxu1 %vm533_vm6, %v2583_v23 }
 0x205   :  { %2179 = vmatmul.mubr.msk.f32.gmra.mrb[12].mxu1 %vm533_vm6, %v2593_v24 }
 0x206   :  { %2181 = vmatprep.mubr.msk.f32.mxu1 %vm533_vm6, %v2598_v29 }
 0x209   :  { %2182 = vmatmul.mubr.msk.f32.gmra.mrb[14].mxu1 %vm533_vm6, %v2607_v30 }
 0x20a   :  { %1148 = vmatprep.mubr.f32.mxu1 %v2333_v1 }
 0x20d   :  { %2092 = vmatmul.mubr.msk.f32.vlgmr.msra.gmra.mrb[16].mxu1 %vm34_vm1, %v2417_v10 }
 0x20e   :  { %1154 = vmatprep.mubr.f32.mxu1 %v2333_v1  ;;  %2096 = vmatpush1.msk.msra.mxu1 %vm44_vm0, %v2089_v18  ;;  %vm964_vm0 = vcmask 654848  }
 0x211   :  { %2093 = vmatmul.mubr.msk.f32.gmra.mrb[18].mxu1 %vm34_vm1, %v2431_v12 }
 0x212   :  { %1160 = vmatprep.mubr.f32.mxu1 %v2333_v1 }
 0x215   :  { %2094 = vmatmul.mubr.msk.f32.gmra.mrb[20].mxu1 %vm34_vm1, %v2397_v7 }
 0x216   :  { %1231 = vmatprep.mubr.f32.mxu1 %v2333_v1 }
 0x219   :  { %2097 = vmatmul.mubr.msk.f32.vlgmr.msra.gmra.mrb[22].mxu1 %vm34_vm1, %v2417_v10  ;;  %v228_v10 = vpop.permute.xlu1 %227 }
 0x21a   :  { %1237 = vmatprep.mubr.f32.mxu1 %v2333_v1 }
 0x21d   :  { %2098 = vmatmul.mubr.msk.f32.gmra.mrb[24].mxu1 %vm34_vm1, %v2431_v12  ;;  %v254_v42 = vpop.permute.xlu1 %253 }
 0x21e   :  { %1243 = vmatprep.mubr.f32.mxu1 %v2333_v1  ;;  %v261_v46 = vsel %vm259_vm3, %v254_v42, %v2469_v40 }
 0x221   :  { %2099 = vmatmul.mubr.msk.f32.gmra.mrb[26].mxu1 %vm34_vm1, %v2397_v7  ;;  %v237_v7 = vsel %vm235_vm2, %v230_v34, %v2465_v33  ;;  %v236_v33 = vsel %vm235_vm2, %v228_v10, %v230_v34  ;;  %v252_v47 = vpop.permute.xlu1 %251  ;;  %vm973_vm1 = vcmask 786048  }
 0x222   :  { %2188 = vmatprep.mubr.msk.f32.mxu1 %vm533_vm6, %v2505_v53  ;;  %v244_v49 = vadd.f32 %v237_v7, %v2455_v26  ;;  %v243_v56 = vadd.f32 %v236_v33, %v2453_v25  ;;  %v260_v62 = vsel %vm259_vm3, %v252_v47, %v254_v42  ;;  %v404_v25 = vadd.f32 %v398_v14, %v2457_v27 }
 0x224   :  { %v268_v54 = vadd.f32 %v261_v46, %v244_v49  ;;  %v267_v6 = vadd.f32 %v260_v62, %v243_v56  ;;  %v421_v15 = vadd.f32 %v415_v3, %v404_v25 }
 0x226   :  { %v2669_v28 = vadd.f32 %v2461_v31, %v268_v54  ;;  %v2686_v11 = vadd.f32 %v2463_v32, %v268_v54  ;;  %v2693_v21 = vadd.f32 %v2461_v31, %v267_v6  ;;  %v2697_v34 = vadd.f32 %v2487_v61, %v421_v15 }
 0x227   :  { %v2706_v7 = vadd.f32 %v2463_v32, %v267_v6  ;;  %v482_v61 = vadd.f32 %v2483_v58, %v422_v55 }
 0x228   :  { %v282_v9 = vmul.f32 0.5, %v2669_v28  ;;  %v335_v27 = vmul.f32 0.5, %v2686_v11  ;;  %v281_v31 = vmul.f32 0.5, %v2693_v21  ;;  %v434_v43 = vmul.f32 0.5, %v2697_v34 }
 0x229   :  { %v334_v50 = vmul.f32 0.5, %v2706_v7  ;;  %v486_v52 = vmul.f32 0.5, %v482_v61 }
 0x22a   :  { %2263 = vtanh.f32 %v282_v9 }
 0x22b   :  { %2265 = vtanh.f32 %v435_v17 }
 0x22c   :  { %2267 = vtanh.f32 %v335_v27 }
 0x22d   :  { %2269 = vtanh.f32 %v281_v31 }
 0x22e   :  { %2271 = vtanh.f32 %v434_v43 }
 0x22f   :  { %2273 = vtanh.f32 %v334_v50 }
 0x230   :  { %2275 = vtanh.f32 %v486_v52 }
 0x234   :  { %v2264_v33 = vpop.eup %2263 }
 0x235   :  { %v2266_v47 = vpop.eup %2265  ;;  %v290_v56 = vadd.f32 1.0, %v2264_v33 }
 0x236   :  { %v441_v14 = vadd.f32 1.0, %v2266_v47 }
 0x237   :  { %v294_v6 = vmul.f32 0.5, %v290_v56 }
 0x238   :  { %v444_v9 = vmul.f32 0.5, %v441_v14 }
 0x2d0   :  { %v2632_v36 = vpop.f32.mrb[8].mxu1 }
 0x2d1   :  { %v2634_v37 = vpop.f32.mrb[9].mxu1 }
 0x2d4   :  { %v2636_v39 = vpop.f32.mrb[10].mxu1 }
 0x2d5   :  { %v2638_v41 = vpop.f32.mrb[11].mxu1 }
 0x2d8   :  { %v2640_v12 = vpop.f32.mrb[12].mxu1 }
 0x2d9   :  { %v2642_v44 = vpop.f32.mrb[13].mxu1 }
 0x2dc   :  { %v2650_v48 = vpop.f32.mrb[14].mxu1 }
 0x2dd   :  { %v2655_v51 = vpop.f32.mrb[15].mxu1 }
 0x2e0   :  { %v2659_v57 = vpop.f32.mrb[16].mxu1 }
 0x2e1   :  { %v1254_v40 = vrot.slane %v2659_v57, 4  ;;  %v2662_v59 = vpop.f32.mrb[17].mxu1 }
 0x2e2   :  { %v1255_v26 = vrot.slane %v2662_v59, 4 }
 0x2e3   :  { %1258 = vrot.lane.b32.xlu1 %v1254_v40, %s2335_s1  ;;  %v481_v40 = vadd.f32 %v2483_v58, %v421_v15 }
 0x2e4   :  { %1260 = vrot.lane.b32.xlu0 %v1255_v26, %s2335_s1  ;;  %v2673_v13 = vpop.f32.mrb[18].mxu1  ;;  %v2268_v26 = vpop.eup %2267 }
 0x2e5   :  { %v2679_v4 = vpop.f32.mrb[19].mxu1  ;;  %v485_v62 = vmul.f32 0.5, %v481_v40  ;;  %v343_v3 = vadd.f32 1.0, %v2268_v26  ;;  %v2270_v25 = vpop.eup %2269 }
 0x2e6   :  { %v2272_v17 = vpop.eup %2271  ;;  %v289_v31 = vadd.f32 1.0, %v2270_v25 }
 0x2e7   :  { %1283 = vrot.lane.b32.xlu1 %v2679_v4, %s2336_s7  ;;  %2277 = vtanh.f32 %v485_v62  ;;  %v2274_v58 = vpop.eup %2273  ;;  %v440_v43 = vadd.f32 1.0, %v2272_v17 }
 0x2e8   :  { %v2688_v16 = vpop.f32.mrb[20].mxu1  ;;  %v2276_v27 = vpop.eup %2275 }
 0x2e9   :  { %v1164_v18 = vpop.f32.mrb[21].mxu1  ;;  %v1410_v35 = vrot.slane %v2688_v16, 4  ;;  %v494_v50 = vadd.f32 1.0, %v2276_v27  ;;  %v443_v33 = vmul.f32 0.5, %v440_v43 }
 0x2ea   :  { %1433 = vrot.lane.b32.xlu0 %v1164_v18, %s2338_s9  ;;  %v1411_v45 = vrot.slane %v1164_v18, 4  ;;  %v347_v18 = vmul.f32 0.5, %v343_v3 }
 0x2eb   :  { %v446_v26 = vmul.f32 %v443_v33, %v2697_v34  ;;  %v1452_v34 = vpop.permute.xlu1 %1451 }
 0x2ec   :  { %v2700_v10 = vpop.f32.mrb[22].mxu1 }
 0x2ed   :  { %v1256_v38 = vrot.slane %v2700_v10, 4  ;;  %v2703_v42 = vpop.f32.mrb[23].mxu1  ;;  %v452_v62 = vrot.slane %v446_v26, 4 }
 0x2ee   :  { %1414 = vrot.lane.b32.xlu0 %v1410_v35, %s2337_s8  ;;  %v1257_v32 = vrot.slane %v2703_v42, 4  ;;  %v298_v35 = vmul.f32 %v294_v6, %v2669_v28 }
 0x2ef   :  { %1262 = vrot.lane.b32.xlu1 %v1256_v38, %s2335_s1  ;;  %v447_v38 = vmul.f32 %v444_v9, %v2676_v0  ;;  %v498_v0 = vmul.f32 0.5, %v494_v50  ;;  %v1501_v25 = vpop.permute.xlu1 %1500 }
 0x2f0   :  { %v2713_v46 = vpop.f32.mrb[24].mxu1 }
 0x2f1   :  { %v2715_v49 = vpop.f32.mrb[25].mxu1  ;;  %v453_v52 = vrot.slane %v447_v38, 4  ;;  %v2278_v47 = vpop.eup %2277 }
 0x2f2   :  { %1416 = vrot.lane.b32.xlu0 %v1411_v45, %s2337_s8  ;;  %v351_v45 = vmul.f32 %v347_v18, %v2686_v11  ;;  %v502_v11 = vmul.f32 %v498_v0, %v482_v61  ;;  %v493_v14 = vadd.f32 1.0, %v2278_v47  ;;  %v2750_v61 = vpop.permute.xlu0 %1354 }
 0x2f3   :  { %1287 = vrot.lane.b32.xlu1 %v2715_v49, %s2336_s7  ;;  %v2748_v6 = vpop.permute.xlu1 %1303 }
 0x2f4   :  { %v1245_v54 = vpop.f32.mrb[26].mxu1  ;;  %v359_v28 = vrot.slane %v351_v45, 4  ;;  %v497_v3 = vmul.f32 0.5, %v493_v14 }
 0x2f5   :  { %v1247_v55 = vpop.f32.mrb[27].mxu1  ;;  %v1412_v60 = vrot.slane %v1245_v54, 4 }
 0x2f6   :  { %1264 = vrot.lane.b32.xlu0 %v1257_v32, %s2335_s1  ;;  %v1413_v15 = vrot.slane %v1247_v55, 4  ;;  %v342_v32 = vadd.f32 1.0, %v2274_v58 }
 0x2f7   :  { %1435 = vrot.lane.b32.xlu1 %v1245_v54, %s2338_s9  ;;  %v293_v54 = vmul.f32 0.5, %v289_v31 }
 0x2fa   :  { %1285 = vrot.lane.b32.xlu0 %v2713_v46, %s2336_s7 }
 0x2fb   :  { %1418 = vrot.lane.b32.xlu1 %v1412_v60, %s2337_s8  ;;  %v297_v60 = vmul.f32 %v293_v54, %v2693_v21  ;;  %v501_v21 = vmul.f32 %v497_v3, %v481_v40 }
 0x2fe   :  { %1437 = vrot.lane.b32.xlu0 %v1247_v55, %s2338_s9  ;;  %v346_v55 = vmul.f32 0.5, %v342_v32 }
 0x2ff   :  { %1281 = vrot.lane.b32.xlu1 %v2673_v13, %s2336_s7 }
 0x300   :  { %v350_v56 = vmul.f32 %v346_v55, %v2706_v7 }
 0x302   :  { %1420 = vrot.lane.b32.xlu0 %v1413_v15, %s2337_s8 }
 0x303   :  { %307 = vrot.lane.b32.xlu1 %v298_v35, %s2338_s9 }
 0x306   :  { %1431 = vrot.lane.b32.xlu0 %v2688_v16, %s2338_s9  ;;  %v358_v16 = vrot.slane %v350_v56, 4 }
 0x307   :  { %457 = vrot.lane.b32.xlu1 %v453_v52, %s2341_s12 }
 0x30a   :  { %364 = vrot.lane.b32.xlu0 %v359_v28, %s2339_s10 }
 0x30b   :  { %305 = vrot.lane.b32.xlu1 %v297_v60, %s2338_s9 }
 0x30e   :  { %511 = vrot.lane.b32.xlu0 %v502_v11, %s2340_s11 }
 0x30f   :  { %455 = vrot.lane.b32.xlu1 %v452_v62, %s2341_s12 }
 0x312   :  { %362 = vrot.lane.b32.xlu0 %v358_v16, %s2339_s10 }
 0x316   :  { %509 = vrot.lane.b32.xlu0 %v501_v21, %s2340_s11  ;;  %v2783_v21 = vrot.slane %v1501_v25, 4 }
 0x355   :  { %v1259_v7 = vpop.permute.xlu1 %1258 }
 0x356   :  { %v1261_v9 = vpop.permute.xlu0 %1260 }
 0x357   :  { %v1266_v28 = vsel %vm235_vm2, %v1259_v7, %v1261_v9 }
 0x358   :  { %v1273_v62 = vadd.f32 %v1266_v28, %v2659_v57 }
 0x359   :  { %v1284_v58 = vpop.permute.xlu1 %1283 }
 0x35c   :  { %v2752_v17 = vpop.permute.xlu0 %1433 }
 0x360   :  { %v1415_v15 = vpop.permute.xlu0 %1414 }
 0x361   :  { %v1263_v18 = vpop.permute.xlu1 %1262 }
 0x362   :  { %v1267_v40 = vsel %vm235_vm2, %v1261_v9, %v1263_v18 }
 0x363   :  { %v1274_v45 = vadd.f32 %v1267_v40, %v2662_v59 }
 0x364   :  { %v1417_v27 = vpop.permute.xlu0 %1416 }
 0x365   :  { %v2754_v35 = vpop.permute.xlu1 %1287 }
 0x368   :  { %v1265_v38 = vpop.permute.xlu0 %1264 }
 0x369   :  { %v1268_v31 = vsel %vm235_vm2, %v1263_v18, %v1265_v38  ;;  %v1436_v43 = vpop.permute.xlu1 %1435  ;;  %v1453_v18 = vrot.slane %v1452_v34, 4 }
 0x36a   :  { %v1275_v50 = vadd.f32 %v1268_v31, %v2700_v10  ;;  %v1440_v60 = vsel %vm313_vm5, %v2752_v17, %v1436_v43 }
 0x36c   :  { %v1286_v32 = vpop.permute.xlu0 %1285 }
 0x36d   :  { %v1290_v52 = vsel %vm259_vm3, %v1284_v58, %v1286_v32  ;;  %v1291_v54 = vsel %vm259_vm3, %v1286_v32, %v2754_v35  ;;  %v1419_v33 = vpop.permute.xlu1 %1418 }
 0x36e   :  { %v1297_v0 = vadd.f32 %v1290_v52, %v1274_v45  ;;  %v1298_v55 = vadd.f32 %v1291_v54, %v1275_v50  ;;  %v1423_v47 = vsel %vm397_vm4, %v1417_v27, %v1419_v33  ;;  %v1422_v45 = vsel %vm397_vm4, %v1415_v15, %v1417_v27 }
 0x36f   :  { %v1429_v59 = vadd.f32 %v1423_v47, %v2679_v4 }
 0x370   :  { %v2768_v26 = vpop.permute.xlu0 %1437  ;;  %v2771_v10 = vadd.f32 %v2748_v6, %v1297_v0  ;;  %v2774_v11 = vadd.f32 %v2748_v6, %v1298_v55  ;;  %v2777_v56 = vadd.f32 %v2750_v61, %v1297_v0  ;;  %v2780_v14 = vadd.f32 %v2750_v61, %v1298_v55 }
 0x371   :  { %v1446_v16 = vadd.f32 %v1440_v60, %v1429_v59  ;;  %v1282_v3 = vpop.permute.xlu1 %1281  ;;  %v1441_v15 = vsel %vm313_vm5, %v1436_v43, %v2768_v26  ;;  %v1276_v43 = vadd.f32 %v1265_v38, %v2703_v42 }
 0x372   :  { %v1289_v4 = vsel %vm259_vm3, %v1282_v3, %v1284_v58  ;;  %v1311_v7 = vmul.f32 0.5, %v2771_v10  ;;  %v1312_v9 = vmul.f32 0.5, %v2774_v11  ;;  %v1362_v31 = vmul.f32 0.5, %v2777_v56 }
 0x373   :  { %v1296_v40 = vadd.f32 %v1289_v4, %v1273_v62  ;;  %v1363_v57 = vmul.f32 0.5, %v2780_v14  ;;  %v2792_v32 = vadd.f32 %v2783_v21, %v1446_v16  ;;  %v2808_v55 = vadd.f32 %v1453_v18, %v1446_v16 }
 0x374   :  { %v1421_v50 = vpop.permute.xlu0 %1420  ;;  %2279 = vtanh.f32 %v1311_v7  ;;  %vm984_vm3 = vcmask 917248  }
 0x375   :  { %v2795_v25 = vadd.f32 %v2748_v6, %v1296_v40  ;;  %v2798_v58 = vadd.f32 %v2750_v61, %v1296_v40  ;;  %v1424_v34 = vsel %vm397_vm4, %v1419_v33, %v1421_v50  ;;  %v308_v52 = vpop.permute.xlu1 %307  ;;  %2281 = vtanh.f32 %v1312_v9 }
 0x376   :  { %v1430_v27 = vadd.f32 %v1424_v34, %v2713_v46  ;;  %v315_v54 = vsel %vm313_vm5, %v308_v52, %v2534_v63  ;;  %2283 = vtanh.f32 %v1362_v31  ;;  %v1428_v33 = vadd.f32 %v1422_v45, %v2673_v13 }
 0x377   :  { %v1310_v28 = vmul.f32 0.5, %v2795_v25  ;;  %v1361_v0 = vmul.f32 0.5, %v2798_v58  ;;  %321 = vst [vmem:[#allocation2 + $0x8] sm:$0xf] %v315_v54  ;;  %2285 = vtanh.f32 %v1363_v57  ;;  %v1509_v59 = vmul.f32 0.5, %v2792_v32 }
 0x378   :  { %v1447_v47 = vadd.f32 %v1441_v15, %v1430_v27  ;;  %v1432_v60 = vpop.permute.xlu0 %1431  ;;  %v1459_v13 = vmul.f32 0.5, %v2808_v55 }
 0x379   :  { %2287 = vtanh.f32 %v1310_v28  ;;  %v1439_v63 = vsel %vm313_vm5, %v1432_v60, %v2752_v17  ;;  %v458_v46 = vpop.permute.xlu1 %457  ;;  %v1299_v17 = vadd.f32 %v2754_v35, %v1276_v43 }
 0x37a   :  { %2289 = vtanh.f32 %v1361_v0  ;;  %v1445_v62 = vadd.f32 %v1439_v63, %v1428_v33  ;;  %v463_v16 = vsel %vm461_vm11, %v458_v46, %v2549_v8  ;;  %v2818_v3 = vadd.f32 %v2783_v21, %v1447_v47 }
 0x37b   :  { %468 = vst [vmem:[#allocation2 + $0x20] sm:$0xf] %v463_v16  ;;  %v2821_v4 = vadd.f32 %v1453_v18, %v1447_v47  ;;  %v1494_v8 = vadd.f32 %v1421_v50, %v2715_v49  ;;  %2291 = vtanh.f32 %v1509_v59  ;;  %v2836_v49 = vadd.f32 %v2750_v61, %v1299_v17 }
 0x37c   :  { %v2823_v42 = vadd.f32 %v1453_v18, %v1445_v62  ;;  %v365_v38 = vpop.permute.xlu0 %364  ;;  %v1510_v40 = vmul.f32 0.5, %v2818_v3  ;;  %2293 = vtanh.f32 %v1459_v13  ;;  %v2840_v54 = vadd.f32 %v2783_v21, %v1445_v62 }
 0x37d   :  { %v372_v7 = vsel %vm370_vm8, %v365_v38, %v2539_v2  ;;  %v306_v9 = vpop.permute.xlu1 %305  ;;  %v1460_v45 = vmul.f32 0.5, %v2821_v4  ;;  %v1364_v59 = vmul.f32 0.5, %v2836_v49 }
 0x37e   :  { %378 = vst [vmem:[#allocation2 + $0x8] sm:$0xf0] %v372_v7  ;;  %v314_v31 = vsel %vm313_vm5, %v306_v9, %v308_v52  ;;  %v2280_v57 = vpop.eup %2279  ;;  %v1458_v18 = vmul.f32 0.5, %v2823_v42  ;;  %2295 = vtanh.f32 %v1510_v40  ;;  %v1496_v52 = vadd.f32 %v1494_v8, %v2768_v26 }
 0x37f   :  { %320 = vst [vmem:[#allocation2] sm:$0xf] %v314_v31  ;;  %v2282_v35 = vpop.eup %2281  ;;  %2297 = vtanh.f32 %v1460_v45  ;;  %v1319_v60 = vadd.f32 1.0, %v2280_v57  ;;  %v1508_v62 = vmul.f32 0.5, %v2840_v54 }
 0x380   :  { %v512_v34 = vpop.permute.xlu0 %511  ;;  %v2284_v15 = vpop.eup %2283  ;;  %2299 = vtanh.f32 %v1458_v18  ;;  %v2850_v16 = vadd.f32 %v2783_v21, %v1496_v52 }
 0x381   :  { %v519_v2 = vsel %vm517_vm10, %v512_v34, %v2544_v5  ;;  %v456_v27 = vpop.permute.xlu1 %455  ;;  %v2286_v50 = vpop.eup %2285  ;;  %v2844_v5 = vadd.f32 %v2748_v6, %v1299_v17  ;;  %v1370_v43 = vadd.f32 1.0, %v2284_v15  ;;  %v1320_v6 = vadd.f32 1.0, %v2282_v35 }
 0x382   :  { %525 = vst [vmem:[#allocation2 + $0x20] sm:$0xf0] %v519_v2  ;;  %v462_v28 = vsel %vm461_vm11, %v456_v27, %v458_v46  ;;  %v1371_v17 = vadd.f32 1.0, %v2286_v50  ;;  %2301 = vtanh.f32 %v1364_v59  ;;  %v1511_v35 = vmul.f32 0.5, %v2850_v16 }
 0x383   :  { %v2288_v0 = vpop.eup %2287  ;;  %467 = vst [vmem:[#allocation2 + $0x18] sm:$0xf] %v462_v28  ;;  %v1313_v7 = vmul.f32 0.5, %v2844_v5  ;;  %v1374_v31 = vmul.f32 0.5, %v1370_v43  ;;  %2303 = vtanh.f32 %v1508_v62 }
 0x384   :  { %v2290_v33 = vpop.eup %2289  ;;  %v363_v47 = vpop.permute.xlu0 %362  ;;  %v1318_v61 = vadd.f32 1.0, %v2288_v0  ;;  %v1375_v52 = vmul.f32 0.5, %v1371_v17 }
 0x385   :  { %v371_v26 = vsel %vm370_vm8, %v363_v47, %v365_v38  ;;  %v1369_v63 = vadd.f32 1.0, %v2290_v33  ;;  %v2292_v9 = vpop.eup %2291  ;;  %v1323_v38 = vmul.f32 0.5, %v1319_v60  ;;  %v528_v15 = vld [vmem:[#allocation2 + $0x8] sm:$0xff]  ;;  %2305 = vtanh.f32 %v1313_v7 }
 0x386   :  { %377 = vst [vmem:[#allocation2] sm:$0xf0] %v371_v26  ;;  %v1322_v46 = vmul.f32 0.5, %v1318_v61  ;;  %v2294_v45 = vpop.eup %2293  ;;  %v1517_v0 = vadd.f32 1.0, %v2292_v9  ;;  %2307 = vtanh.f32 %v1511_v35  ;;  %v1379_v60 = vmul.f32 %v1375_v52, %v2780_v14 }
 0x387   :  { %v1373_v13 = vmul.f32 0.5, %v1369_v63  ;;  %v1465_v33 = vadd.f32 1.0, %v2294_v45 }
 0x388   :  { %v510_v40 = vpop.permute.xlu0 %509  ;;  %v1326_v8 = vmul.f32 %v1322_v46, %v2795_v25  ;;  %v2296_v27 = vpop.eup %2295  ;;  %v1324_v25 = vmul.f32 0.5, %v1320_v6  ;;  %v1521_v59 = vmul.f32 0.5, %v1517_v0  ;;  %v1387_v17 = vrot.slane %v1379_v60, 4 }
 0x389   :  { %v518_v57 = vsel %vm517_vm10, %v510_v40, %v512_v34  ;;  %v1377_v18 = vmul.f32 %v1373_v13, %v2798_v58  ;;  %v531_v2 = vld [vmem:[#allocation2 + $0x20] sm:$0xff]  ;;  %v2298_v28 = vpop.eup %2297  ;;  %v1327_v34 = vmul.f32 %v1323_v38, %v2771_v10  ;;  %v1378_v58 = vmul.f32 %v1374_v31, %v2777_v56 }
 0x38a   :  { %524 = vst [vmem:[#allocation2 + $0x18] sm:$0xf0] %v518_v57  ;;  %1334 = vrot.lane.b32.xlu1 %v1326_v8, %s2338_s9  ;;  %v2200_v21 = vpack.c.bf16 %v531_v2, %v528_v15  ;;  %v2300_v47 = vpop.eup %2299  ;;  %v1328_v61 = vmul.f32 %v1324_v25, %v2774_v11  ;;  %v1518_v43 = vadd.f32 1.0, %v2296_v27  ;;  %v1466_v26 = vadd.f32 1.0, %v2298_v28 }
 0x38b   :  { %v1385_v50 = vrot.slane %v1377_v18, 4  ;;  %v1386_v63 = vrot.slane %v1378_v58, 4  ;;  %v1468_v62 = vmul.f32 0.5, %v1465_v33  ;;  %v1464_v10 = vadd.f32 1.0, %v2300_v47 }
 0x38c   :  { %2201 = vmatprep.subr.bf16.mxu0 %v2200_v21  ;;  %v2302_v6 = vpop.eup %2301  ;;  %v1522_v7 = vmul.f32 0.5, %v1518_v43  ;;  %v1469_v9 = vmul.f32 0.5, %v1466_v26  ;;  %v1525_v14 = vmul.f32 %v1521_v59, %v2792_v32 }
 0x38d   :  { %1389 = vrot.lane.b32.xlu0 %v1385_v50, %s2339_s10  ;;  %v527_v56 = vld [vmem:[#allocation2] sm:$0xff]  ;;  %v2304_v11 = vpop.eup %2303  ;;  %v1471_v40 = vmul.f32 %v1468_v62, %v2808_v55  ;;  %v1467_v8 = vmul.f32 0.5, %v1464_v10  ;;  %v1372_v18 = vadd.f32 1.0, %v2302_v6 }
 0x38e   :  { %1336 = vrot.lane.b32.xlu1 %v1327_v34, %s2338_s9  ;;  %v1526_v31 = vmul.f32 %v1522_v7, %v2818_v3  ;;  %v1472_v45 = vmul.f32 %v1469_v9, %v2821_v4  ;;  %v1516_v57 = vadd.f32 1.0, %v2304_v11 }
 0x38f   :  { %v2306_v38 = vpop.eup %2305  ;;  %v1477_v2 = vrot.slane %v1471_v40, 4  ;;  %v1470_v32 = vmul.f32 %v1467_v8, %v2823_v42  ;;  %v1376_v35 = vmul.f32 0.5, %v1372_v18 }
 0x390   :  { %v2308_v15 = vpop.eup %2307  ;;  %v1321_v55 = vadd.f32 1.0, %v2306_v38  ;;  %v1478_v21 = vrot.slane %v1472_v45, 4  ;;  %v1520_v3 = vmul.f32 0.5, %v1516_v57 }
 0x391   :  { %1338 = vrot.lane.b32.xlu0 %v1328_v61, %s2338_s9  ;;  %v530_v46 = vld [vmem:[#allocation2 + $0x18] sm:$0xff]  ;;  %v1476_v4 = vrot.slane %v1470_v32, 4  ;;  %v1519_v50 = vadd.f32 1.0, %v2308_v15  ;;  %v1380_v25 = vmul.f32 %v1376_v35, %v2836_v49 }
 0x392   :  { %1391 = vrot.lane.b32.xlu1 %v1386_v63, %s2339_s10  ;;  %v2202_v13 = vpack.c.bf16 %v530_v46, %v527_v56  ;;  %v1325_v27 = vmul.f32 0.5, %v1321_v55  ;;  %v1524_v42 = vmul.f32 %v1520_v3, %v2840_v54 }
 0x393   :  { %v1523_v28 = vmul.f32 0.5, %v1519_v50  ;;  %v1388_v34 = vrot.slane %v1380_v25, 4 }
 0x394   :  { %2203 = vmatpush1.bf16.msra.mxu0 %v2202_v13  ;;  %v1329_v52 = vmul.f32 %v1325_v27, %v2844_v5 }
 0x395   :  { %1393 = vrot.lane.b32.xlu0 %v1387_v17, %s2339_s10  ;;  %v1527_v58 = vmul.f32 %v1523_v28, %v2850_v16 }
 0x396   :  { %1534 = vrot.lane.b32.xlu1 %v1525_v14, %s2340_s11 }
 0x397   :  { %2072 = vmatmul.mubr.msk.f32.vlgmr.msra.gmra.mrb[4].mxu0 %vm533_vm6, %v2505_v53 }
 0x398   :  { %628 = vmatprep.mubr.f32.mxu0 %v2333_v1 }
 0x399   :  { %1536 = vrot.lane.b32.xlu0 %v1526_v31, %s2340_s11 }
 0x39a   :  { %1481 = vrot.lane.b32.xlu1 %v1477_v2, %s2341_s12 }
 0x39b   :  { %2073 = vmatmul.mubr.msk.f32.gmra.mrb[6].mxu0 %vm533_vm6, %v2562_v19 }
 0x39c   :  { %634 = vmatprep.mubr.f32.mxu0 %v2333_v1 }
 0x39d   :  { %1483 = vrot.lane.b32.xlu0 %v1478_v21, %s2341_s12 }
 0x39e   :  { %1479 = vrot.lane.b32.xlu1 %v1476_v4, %s2341_s12 }
 0x39f   :  { %2074 = vmatmul.mubr.msk.f32.gmra.mrb[8].mxu0 %vm533_vm6, %v2567_v20 }
 0x3a0   :  { %640 = vmatprep.mubr.f32.mxu0 %v2333_v1 }
 0x3a1   :  { %1532 = vrot.lane.b32.xlu0 %v1524_v42, %s2340_s11 }
 0x3a2   :  { %1340 = vrot.lane.b32.xlu1 %v1329_v52, %s2338_s9 }
 0x3a3   :  { %2075 = vmatmul.mubr.msk.f32.gmra.mrb[10].mxu0 %vm533_vm6, %v2577_v22 }
 0x3a4   :  { %646 = vmatprep.mubr.f32.mxu0 %v2333_v1 }
 0x3a5   :  { %1395 = vrot.lane.b32.xlu0 %v1388_v34, %s2339_s10 }
 0x3a6   :  { %1538 = vrot.lane.b32.xlu1 %v1527_v58, %s2340_s11 }
 0x3a7   :  { %2076 = vmatmul.mubr.msk.f32.gmra.mrb[12].mxu0 %vm533_vm6, %v2583_v23 }
 0x3a8   :  { %652 = vmatprep.mubr.f32.mxu0 %v2333_v1 }
 0x3ab   :  { %2077 = vmatmul.mubr.msk.f32.gmra.mrb[14].mxu0 %vm533_vm6, %v2593_v24 }
 0x3ac   :  { %658 = vmatprep.mubr.f32.mxu0 %v2333_v1 }
 0x3af   :  { %2078 = vmatmul.mubr.msk.f32.gmra.mrb[16].mxu0 %vm533_vm6, %v2598_v29 }
 0x3b0   :  { %664 = vmatprep.mubr.f32.mxu0 %v2333_v1 }
 0x3b3   :  { %2079 = vmatmul.mubr.msk.f32.gmra.mrb[18].mxu0 %vm533_vm6, %v2607_v30 }
 0x3b4   :  { %1619 = vmatprep.mubr.f32.mxu0 %v2333_v1 }
 0x3fc   :  { %v1335_v49 = vpop.permute.xlu1 %1334 }
 0x3ff   :  { %v1390_v54 = vpop.permute.xlu0 %1389 }
 0x400   :  { %v1337_v5 = vpop.permute.xlu1 %1336 }
 0x401   :  { %v1342_v16 = vsel %vm313_vm5, %v1335_v49, %v1337_v5 }
 0x402   :  { %1348 = vst [vmem:[#allocation2] sm:$0xf] %v1342_v16 }
 0x403   :  { %v1339_v0 = vpop.permute.xlu0 %1338 }
 0x404   :  { %v1343_v33 = vsel %vm313_vm5, %v1337_v5, %v1339_v0  ;;  %v1392_v47 = vpop.permute.xlu1 %1391 }
 0x405   :  { %1349 = vst [vmem:[#allocation2 + $0x8] sm:$0xf] %v1343_v33  ;;  %v1397_v61 = vsel %vm370_vm8, %v1390_v54, %v1392_v47 }
 0x406   :  { %1403 = vst [vmem:[#allocation2] sm:$0xf0] %v1397_v61 }
 0x407   :  { %v1394_v60 = vpop.permute.xlu0 %1393 }
 0x408   :  { %v1398_v43 = vsel %vm370_vm8, %v1392_v47, %v1394_v60  ;;  %v1535_v26 = vpop.permute.xlu1 %1534 }
 0x409   :  { %1404 = vst [vmem:[#allocation2 + $0x8] sm:$0xf0] %v1398_v43 }
 0x40b   :  { %v1537_v63 = vpop.permute.xlu0 %1536 }
 0x40c   :  { %v1541_v59 = vsel %vm517_vm10, %v1535_v26, %v1537_v63  ;;  %v1482_v62 = vpop.permute.xlu1 %1481 }
 0x40d   :  { %1547 = vst [vmem:[#allocation2 + $0x20] sm:$0xf0] %v1541_v59  ;;  %v1549_v57 = vld [vmem:[#allocation2] sm:$0xff] }
 0x40f   :  { %v1484_v10 = vpop.permute.xlu0 %1483 }
 0x410   :  { %v1486_v56 = vsel %vm461_vm11, %v1482_v62, %v1484_v10  ;;  %1492 = vst.msk [vmem:[#allocation2 + $0x28] sm:$0xf] %vm322_vm7, %v1484_v10  ;;  %v1480_v46 = vpop.permute.xlu1 %1479  ;;  %v1550_v8 = vld [vmem:[#allocation2 + $0x8] sm:$0xff] }
 0x411   :  { %1491 = vst [vmem:[#allocation2 + $0x20] sm:$0xf] %v1486_v56  ;;  %v1485_v13 = vsel %vm461_vm11, %v1480_v46, %v1482_v62 }
 0x412   :  { %1490 = vst [vmem:[#allocation2 + $0x18] sm:$0xf] %v1485_v13 }
 0x413   :  { %v1533_v6 = vpop.permute.xlu0 %1532 }
 0x414   :  { %v1540_v17 = vsel %vm517_vm10, %v1533_v6, %v1535_v26  ;;  %v1341_v7 = vpop.permute.xlu1 %1340 }
 0x415   :  { %1546 = vst [vmem:[#allocation2 + $0x18] sm:$0xf0] %v1540_v17  ;;  %v1344_v9 = vsel %vm313_vm5, %v1339_v0, %v1341_v7  ;;  %vm993_vm5 = vcmask 1048448  }
 0x416   :  { %1350 = vst.msk [vmem:[#allocation2 + $0x10] sm:$0xf] %vm322_vm7, %v1344_v9 }
 0x417   :  { %v1396_v11 = vpop.permute.xlu0 %1395 }
 0x418   :  { %v1399_v14 = vsel %vm370_vm8, %v1394_v60, %v1396_v11  ;;  %v1539_v40 = vpop.permute.xlu1 %1538  ;;  %v1553_v38 = vld [vmem:[#allocation2 + $0x20] sm:$0xff] }
 0x419   :  { %1405 = vst.msk [vmem:[#allocation2 + $0x10] sm:$0xf0] %vm379_vm9, %v1399_v14  ;;  %v1542_v31 = vsel %vm517_vm10, %v1537_v63, %v1539_v40  ;;  %v2208_v45 = vpack.c.bf16 %v1553_v38, %v1550_v8 }
 0x41a   :  { %1548 = vst.msk [vmem:[#allocation2 + $0x28] sm:$0xf0] %vm379_vm9, %v1542_v31 }
 0x41b   :  { %2209 = vmatprep.subr.bf16.mxu0 %v2208_v45 }
 0x41c   :  { %v1552_v18 = vld [vmem:[#allocation2 + $0x18] sm:$0xff] }
 0x41d   :  { %v2210_v15 = vpack.c.bf16 %v1552_v18, %v1549_v57 }
 0x41f   :  { %2211 = vmatpush1.bf16.msra.mxu0 %v2210_v15 }
 0x420   :  { %v1551_v2 = vld [vmem:[#allocation2 + $0x10] sm:$0xff] }
 0x421   :  { %v1554_v32 = vld [vmem:[#allocation2 + $0x28] sm:$0xff] }
 0x422   :  { %v2212_v55 = vpack.c.bf16 %v1554_v32, %v1551_v2  ;;  %2100 = vmatmul.mubr.msk.f32.vlgmr.msra.gmra.mrb[20].mxu0 %vm533_vm6, %v2505_v53 }
 0x423   :  { %1625 = vmatprep.mubr.f32.mxu0 %v2333_v1 }
 0x424   :  { %2213 = vmatprep.subr.bf16.mxu1 %v2212_v55 }
 0x425   :  { %2215 = vmatpush3.bf16.msra.mxu1 %v2212_v55 }
 0x426   :  { %2101 = vmatmul.mubr.msk.f32.gmra.mrb[22].mxu0 %vm533_vm6, %v2562_v19 }
 0x427   :  { %1631 = vmatprep.mubr.f32.mxu0 %v2333_v1 }
 0x428   :  { %2189 = vmatmul.mubr.msk.f32.vlgmr.msra.gmra.mrb[28].mxu1 %vm533_vm6, %v2562_v19 }
 0x429   :  { %2191 = vmatprep.mubr.msk.f32.mxu1 %vm533_vm6, %v2567_v20 }
 0x42a   :  { %2102 = vmatmul.mubr.msk.f32.gmra.mrb[24].mxu0 %vm533_vm6, %v2567_v20 }
 0x42b   :  { %1637 = vmatprep.mubr.f32.mxu0 %v2333_v1 }
 0x42c   :  { %2192 = vmatmul.mubr.msk.f32.gmra.mrb[30].mxu1 %vm533_vm6, %v2577_v22 }
 0x42d   :  { %2194 = vmatprep.mubr.msk.f32.mxu1 %vm533_vm6, %v2583_v23 }
 0x42e   :  { %2103 = vmatmul.mubr.msk.f32.gmra.mrb[26].mxu0 %vm533_vm6, %v2577_v22 }
 0x42f   :  { %1643 = vmatprep.mubr.f32.mxu0 %v2333_v1 }
 0x430   :  { %2195 = vmatmul.mubr.msk.f32.gmra.mrb[32].mxu1 %vm533_vm6, %v2593_v24 }
 0x431   :  { %2197 = vmatprep.mubr.msk.f32.mxu1 %vm533_vm6, %v2598_v29 }
 0x432   :  { %2104 = vmatmul.mubr.msk.f32.gmra.mrb[28].mxu0 %vm533_vm6, %v2583_v23 }
 0x433   :  { %1649 = vmatprep.mubr.f32.mxu0 %v2333_v1 }
 0x434   :  { %2198 = vmatmul.mubr.msk.f32.gmra.mrb[34].mxu1 %vm533_vm6, %v2607_v30 }
 0x436   :  { %2105 = vmatmul.mubr.msk.f32.gmra.mrb[30].mxu0 %vm533_vm6, %v2593_v24 }
 0x437   :  { %1655 = vmatprep.mubr.f32.mxu0 %v2333_v1 }
 0x43a   :  { %2106 = vmatmul.mubr.msk.f32.gmra.mrb[32].mxu0 %vm533_vm6, %v2598_v29 }
 0x43b   :  { %1661 = vmatprep.mubr.f32.mxu0 %v2333_v1 }
 0x43e   :  { %2107 = vmatmul.mubr.msk.f32.gmra.mrb[34].mxu0 %vm533_vm6, %v2607_v30 }
 0x46a   :  { %v2961_v53 = vpop.f32.mrb[4].mxu0 }
 0x46b   :  { %v2963_v19 = vpop.f32.mrb[5].mxu0 }
 0x46e   :  { %v2965_v20 = vpop.f32.mrb[6].mxu0 }
 0x46f   :  { %v2967_v22 = vpop.f32.mrb[7].mxu0 }
 0x472   :  { %v636_v23 = vpop.f32.mrb[8].mxu0 }
 0x473   :  { %782 = vrot.lane.b32.xlu0 %v636_v23, %s2335_s1  ;;  %v638_v24 = vpop.f32.mrb[9].mxu0 }
 0x474   :  { %784 = vrot.lane.b32.xlu1 %v638_v24, %s2335_s1 }
 0x476   :  { %v642_v29 = vpop.f32.mrb[10].mxu0 }
 0x477   :  { %786 = vrot.lane.b32.xlu0 %v2638_v41, %s2335_s1  ;;  %v644_v1 = vpop.f32.mrb[11].mxu0 }
 0x478   :  { %788 = vrot.lane.b32.xlu1 %v642_v29, %s2335_s1 }
 0x47a   :  { %v648_v30 = vpop.f32.mrb[12].mxu0 }
 0x47b   :  { %790 = vrot.lane.b32.xlu0 %v644_v1, %s2335_s1  ;;  %v650_v21 = vpop.f32.mrb[13].mxu0 }
 0x47c   :  { %792 = vrot.lane.b32.xlu1 %v2636_v39, %s2335_s1  ;;  %v2996_v39 = vld [vmem:[%s3505_s3 + $0x8] sm:$0xff] }
 0x47e   :  { %v654_v3 = vpop.f32.mrb[14].mxu0 }
 0x47f   :  { %816 = vrot.lane.b32.xlu0 %v648_v30, %s2337_s8  ;;  %v656_v35 = vpop.f32.mrb[15].mxu0 }
 0x480   :  { %818 = vrot.lane.b32.xlu1 %v650_v21, %s2337_s8 }
 0x482   :  { %v660_v4 = vpop.f32.mrb[16].mxu0 }
 0x483   :  { %820 = vrot.lane.b32.xlu0 %v2642_v44, %s2337_s8  ;;  %v662_v41 = vpop.f32.mrb[17].mxu0 }
 0x484   :  { %822 = vrot.lane.b32.xlu1 %v654_v3, %s2337_s8 }
 0x486   :  { %v666_v27 = vpop.f32.mrb[18].mxu0 }
 0x487   :  { %824 = vrot.lane.b32.xlu0 %v656_v35, %s2337_s8  ;;  %v668_v50 = vpop.f32.mrb[19].mxu0 }
 0x488   :  { %826 = vrot.lane.b32.xlu1 %v2640_v12, %s2337_s8  ;;  %v3001_v12 = vld [vmem:[%s3505_s3 + $0x10] sm:$0xff]  ;;  %s2343_s3 = smov 122  }
 0x48b   :  { %850 = vrot.lane.b32.xlu0 %v660_v4, %s2342_s2 }
 0x48c   :  { %852 = vrot.lane.b32.xlu1 %v662_v41, %s2342_s2 }
 0x48f   :  { %854 = vrot.lane.b32.xlu0 %v2655_v51, %s2342_s2 }
 0x490   :  { %856 = vrot.lane.b32.xlu1 %v666_v27, %s2342_s2 }
 0x493   :  { %858 = vrot.lane.b32.xlu0 %v668_v50, %s2342_s2 }
 0x494   :  { %860 = vrot.lane.b32.xlu1 %v2650_v48, %s2342_s2 }
 0x497   :  { %883 = vperm.xlu0 %2243, %v2996_v39  }
 0x498   :  { %888 = vperm.xlu1 %2244, %v3001_v12  }
 0x4e5   :  { %v783_v44 = vpop.permute.xlu0 %782 }
 0x4e6   :  { %v3005_v51 = vpop.permute.xlu1 %784 }
 0x4e7   :  { %v794_v32 = vsel %vm235_vm2, %v783_v44, %v3005_v51 }
 0x4e8   :  { %v804_v1 = vadd.f32 %v794_v32, %v2961_v53 }
 0x4e9   :  { %v3007_v42 = vpop.permute.xlu0 %786 }
 0x4ea   :  { %v789_v48 = vpop.permute.xlu1 %788  ;;  %v806_v58 = vadd.f32 %v3007_v42, %v2634_v37 }
 0x4ed   :  { %v3009_v25 = vpop.permute.xlu0 %790 }
 0x4ee   :  { %v3011_v52 = vpop.permute.xlu1 %792  ;;  %v796_v23 = vsel %vm235_vm2, %v789_v48, %v3009_v25 }
 0x4ef   :  { %v809_v33 = vadd.f32 %v2632_v36, %v3011_v52  ;;  %v807_v3 = vadd.f32 %v796_v23, %v2965_v20  ;;  %v795_v20 = vsel %vm235_vm2, %v3005_v51, %v3007_v42 }
 0x4f1   :  { %v817_v28 = vpop.permute.xlu0 %816 }
 0x4f2   :  { %v819_v34 = vpop.permute.xlu1 %818 }
 0x4f3   :  { %v828_v24 = vsel %vm397_vm4, %v817_v28, %v819_v34 }
 0x4f4   :  { %v838_v41 = vadd.f32 %v828_v24, %v804_v1 }
 0x4f5   :  { %v821_v49 = vpop.permute.xlu0 %820  ;;  %v3015_v54 = vpop.f32.mrb[20].mxu0 }
 0x4f6   :  { %v840_v5 = vadd.f32 %v821_v49, %v806_v58  ;;  %v823_v16 = vpop.permute.xlu1 %822  ;;  %v3017_v0 = vpop.f32.mrb[21].mxu0 }
 0x4f9   :  { %v825_v47 = vpop.permute.xlu0 %824  ;;  %v3021_v61 = vpop.f32.mrb[22].mxu0 }
 0x4fa   :  { %v827_v60 = vpop.permute.xlu1 %826  ;;  %v3023_v43 = vpop.f32.mrb[23].mxu0  ;;  %v830_v30 = vsel %vm397_vm4, %v823_v16, %v825_v47 }
 0x4fb   :  { %v843_v26 = vadd.f32 %v827_v60, %v809_v33  ;;  %v3025_v63 = vpop.f32.mrb[28].mxu1  ;;  %v841_v50 = vadd.f32 %v830_v30, %v807_v3  ;;  %v829_v33 = vsel %vm397_vm4, %v819_v34, %v821_v49  ;;  %v831_v24 = vsel %vm397_vm4, %v825_v47, %v827_v60 }
 0x4fc   :  { %v3027_v37 = vpop.f32.mrb[29].mxu1 }
 0x4fd   :  { %v851_v59 = vpop.permute.xlu0 %850  ;;  %v3029_v62 = vpop.f32.mrb[24].mxu0 }
 0x4fe   :  { %v853_v10 = vpop.permute.xlu1 %852  ;;  %v3031_v56 = vpop.f32.mrb[25].mxu0 }
 0x4ff   :  { %v3033_v46 = vpop.f32.mrb[30].mxu1  ;;  %v863_v35 = vsel %vm862_vm12, %v851_v59, %v853_v10  ;;  %v805_v59 = vadd.f32 %v795_v20, %v2963_v19 }
 0x500   :  { %v3035_v36 = vpop.f32.mrb[31].mxu1  ;;  %v873_v44 = vadd.f32 %v863_v35, %v838_v41 }
 0x501   :  { %v855_v13 = vpop.permute.xlu0 %854  ;;  %v3037_v6 = vpop.f32.mrb[26].mxu0  ;;  %v839_v23 = vadd.f32 %v829_v33, %v805_v59 }
 0x502   :  { %v3039_v17 = vadd.f32 %v855_v13, %v840_v5  ;;  %v857_v7 = vpop.permute.xlu1 %856  ;;  %v3041_v9 = vpop.f32.mrb[27].mxu0  ;;  %v864_v32 = vsel %vm862_vm12, %v853_v10, %v855_v13 }
 0x503   :  { %v3043_v11 = vpop.f32.mrb[32].mxu1  ;;  %v874_v42 = vadd.f32 %v864_v32, %v839_v23 }
 0x504   :  { %v3045_v14 = vpop.f32.mrb[33].mxu1 }
 0x505   :  { %v3047_v40 = vpop.f32.mrb[28].mxu0  ;;  %v859_v29 = vpop.permute.xlu0 %858 }
 0x506   :  { %v861_v8 = vpop.permute.xlu1 %860  ;;  %v3049_v38 = vpop.f32.mrb[29].mxu0  ;;  %v865_v27 = vsel %vm862_vm12, %v857_v7, %v859_v29  ;;  %v797_v7 = vsel %vm235_vm2, %v3009_v25, %v3011_v52 }
 0x507   :  { %v3051_v31 = vadd.f32 %v861_v8, %v843_v26  ;;  %v3053_v45 = vpop.f32.mrb[34].mxu1  ;;  %v876_v48 = vadd.f32 %v865_v27, %v841_v50  ;;  %v808_v51 = vadd.f32 %v797_v7, %v2967_v22  ;;  %v866_v1 = vsel %vm862_vm12, %v859_v29, %v861_v8 }
 0x508   :  { %v3055_v57 = vpop.f32.mrb[35].mxu1 }
 0x509   :  { %v3057_v18 = vpop.f32.mrb[30].mxu0  ;;  %v842_v34 = vadd.f32 %v831_v24, %v808_v51 }
 0x50a   :  { %v3059_v15 = vpop.f32.mrb[31].mxu0 }
 0x50b   :  { %v877_v19 = vadd.f32 %v866_v1, %v842_v34 }
 0x50d   :  { %v3061_v2 = vpop.f32.mrb[32].mxu0 }
 0x50e   :  { %v3065_v55 = vpop.f32.mrb[33].mxu0 }
 0x511   :  { %v3072_v21 = vpop.f32.mrb[34].mxu0 }
 0x512   :  { %v3076_v4 = vpop.f32.mrb[35].mxu0 }
 0x516   :  { %v3079_v28 = vpop.permute.xlu0 %883 }
 0x517   :  { %v891_v53 = vadd.f32 %v3079_v28, %v873_v44  ;;  %v3082_v58 = vpop.permute.xlu1 %888  ;;  %v892_v49 = vadd.f32 %v3079_v28, %v874_v42 }
 0x518   :  { %v894_v5 = vadd.f32 %v3082_v58, %v876_v48  ;;  %v895_v30 = vadd.f32 %v3082_v58, %v877_v19 }
 0x519   :  { %v897_v16 = vmul.f32 0.5, %v891_v53  ;;  %v898_v25 = vmul.f32 0.5, %v892_v49 }
 0x51a   :  { %v900_v26 = vmul.f32 0.5, %v894_v5  ;;  %v901_v13 = vmul.f32 0.5, %v895_v30 }
 0x51b   :  { %2309 = vtanh.f32 %v897_v16 }
 0x51c   :  { %2311 = vtanh.f32 %v900_v26 }
 0x51d   :  { %2313 = vtanh.f32 %v898_v25 }
 0x51e   :  { %2315 = vtanh.f32 %v901_v13 }
 0x525   :  { %v2310_v3 = vpop.eup %2309 }
 0x526   :  { %v909_v52 = vadd.f32 1.0, %v2310_v3  ;;  %v2312_v35 = vpop.eup %2311 }
 0x527   :  { %v912_v47 = vadd.f32 1.0, %v2312_v35  ;;  %v2314_v29 = vpop.eup %2313 }
 0x528   :  { %v915_v10 = vmul.f32 0.5, %v909_v52  ;;  %v2316_v41 = vpop.eup %2315  ;;  %v910_v27 = vadd.f32 1.0, %v2314_v29 }
 0x529   :  { %v918_v22 = vmul.f32 0.5, %v912_v47  ;;  %v913_v50 = vadd.f32 1.0, %v2316_v41 }
 0x52a   :  { %v921_v60 = vmul.f32 %v915_v10, %v891_v53  ;;  %v916_v44 = vmul.f32 0.5, %v910_v27 }
 0x52b   :  { %v924_v8 = vmul.f32 %v918_v22, %v894_v5  ;;  %v919_v48 = vmul.f32 0.5, %v913_v50 }
 0x52c   :  { %931 = vrot.lane.b32.xlu0 %v921_v60, %s2343_s3  ;;  %927 = vst.msk [vmem:[%s3507_s4] sm:$0xff] %vm533_vm6, %v921_v60  ;;  %v922_v53 = vmul.f32 %v916_v44, %v892_v49 }
 0x52d   :  { %933 = vrot.lane.b32.xlu1 %v924_v8, %s2343_s3  ;;  %928 = vst.msk [vmem:[%s3507_s4 + $0x10] sm:$0xff] %vm533_vm6, %v924_v8  ;;  %v925_v20 = vmul.f32 %v919_v48, %v895_v30 }
 0x530   :  { %940 = vrot.lane.b32.xlu0 %v921_v60, %s2344_s23 }
 0x531   :  { %942 = vrot.lane.b32.xlu1 %v924_v8, %s2344_s23 }
 0x534   :  { %949 = vrot.lane.b32.xlu0 %v921_v60, %s2345_s24 }
 0x535   :  { %951 = vrot.lane.b32.xlu1 %v924_v8, %s2345_s24 }
 0x538   :  { %958 = vrot.lane.b32.xlu0 %v921_v60, %s2346_s25 }
 0x539   :  { %960 = vrot.lane.b32.xlu1 %v924_v8, %s2346_s25 }
 0x53c   :  { %967 = vrot.lane.b32.xlu0 %v921_v60, %s2347_s26 }
 0x53d   :  { %969 = vrot.lane.b32.xlu1 %v924_v8, %s2347_s26 }
 0x540   :  { %978 = vrot.lane.b32.xlu0 %v922_v53, %s2348_s27 }
 0x541   :  { %980 = vrot.lane.b32.xlu1 %v925_v20, %s2348_s27 }
 0x544   :  { %1879 = vperm.xlu0 %2243, %v2996_v39   ;;  %v893_v39 = vadd.f32 %v3079_v28, %v3039_v17 }
 0x545   :  { %1884 = vperm.xlu1 %2244, %v3001_v12  }
 0x546   :  { %v899_v12 = vmul.f32 0.5, %v893_v39 }
 0x548   :  { %987 = vrot.lane.b32.xlu0 %v922_v53, %s2349_s28  ;;  %2317 = vtanh.f32 %v899_v12 }
 0x549   :  { %989 = vrot.lane.b32.xlu1 %v925_v20, %s2349_s28 }
 0x54c   :  { %996 = vrot.lane.b32.xlu0 %v922_v53, %s2350_s29 }
 0x54d   :  { %998 = vrot.lane.b32.xlu1 %v925_v20, %s2350_s29 }
 0x550   :  { %1004 = vrot.lane.b32.xlu0 %v922_v53, %s2351_s30 }
 0x551   :  { %1006 = vrot.lane.b32.xlu1 %v925_v20, %s2351_s30 }
 0x554   :  { %1779 = vrot.lane.b32.xlu0 %v3029_v62, %s2335_s1  ;;  %v896_v62 = vadd.f32 %v3082_v58, %v3051_v31 }
 0x555   :  { %1789 = vrot.lane.b32.xlu1 %v3033_v46, %s2335_s1  ;;  %v2318_v46 = vpop.eup %2317 }
 0x558   :  { %1781 = vrot.lane.b32.xlu0 %v3031_v56, %s2335_s1  ;;  %v902_v56 = vmul.f32 0.5, %v896_v62 }
 0x559   :  { %1783 = vrot.lane.b32.xlu1 %v3035_v36, %s2335_s1  ;;  %v911_v36 = vadd.f32 1.0, %v2318_v46 }
 0x55a   :  { %2319 = vtanh.f32 %v902_v56 }
 0x55c   :  { %1787 = vrot.lane.b32.xlu0 %v3041_v9, %s2335_s1 }
 0x55d   :  { %1823 = vrot.lane.b32.xlu1 %v3043_v11, %s2337_s8 }
 0x560   :  { %1813 = vrot.lane.b32.xlu0 %v3047_v40, %s2337_s8 }
 0x561   :  { %1817 = vrot.lane.b32.xlu1 %v3045_v14, %s2337_s8 }
 0x564   :  { %1815 = vrot.lane.b32.xlu0 %v3049_v38, %s2337_s8  ;;  %v2320_v17 = vpop.eup %2319 }
 0x565   :  { %1857 = vrot.lane.b32.xlu1 %v3053_v45, %s2342_s2  ;;  %v914_v9 = vadd.f32 1.0, %v2320_v17 }
 0x567   :  { %v920_v14 = vmul.f32 0.5, %v914_v9 }
 0x568   :  { %1821 = vrot.lane.b32.xlu0 %v3059_v15, %s2337_s8 }
 0x569   :  { %1785 = vrot.lane.b32.xlu1 %v3037_v6, %s2335_s1  ;;  %s2352_s1 = smov 68   ;;  %v917_v6 = vmul.f32 0.5, %v911_v36  ;;  %v926_v40 = vmul.f32 %v920_v14, %v896_v62 }
 0x56b   :  { %v923_v11 = vmul.f32 %v917_v6, %v893_v39 }
 0x56c   :  { %1847 = vrot.lane.b32.xlu0 %v3061_v2, %s2342_s2 }
 0x56d   :  { %1851 = vrot.lane.b32.xlu1 %v3055_v57, %s2342_s2 }
 0x570   :  { %1849 = vrot.lane.b32.xlu0 %v3065_v55, %s2342_s2 }
 0x571   :  { %1819 = vrot.lane.b32.xlu1 %v3057_v18, %s2337_s8  ;;  %s2354_s8 = smov 56  }
 0x574   :  { %1855 = vrot.lane.b32.xlu0 %v3076_v4, %s2342_s2 }
 0x575   :  { %1853 = vrot.lane.b32.xlu1 %v3072_v21, %s2342_s2 }
 0x578   :  { %1012 = vrot.lane.b32.xlu0 %v922_v53, %s2352_s1 }
 0x579   :  { %1014 = vrot.lane.b32.xlu1 %v925_v20, %s2352_s1 }
 0x57c   :  { %1022 = vrot.lane.b32.xlu0 %v922_v53, %s2353_s0 }
 0x57d   :  { %1024 = vrot.lane.b32.xlu1 %v923_v11, %s2353_s0 }
 0x580   :  { %1026 = vrot.lane.b32.xlu0 %v925_v20, %s2353_s0 }
 0x581   :  { %1028 = vrot.lane.b32.xlu1 %v926_v40, %s2353_s0 }
 0x584   :  { %1037 = vrot.lane.b32.xlu0 %v923_v11, %s2354_s8 }
 0x585   :  { %1039 = vrot.lane.b32.xlu1 %v926_v40, %s2354_s8 }
 0x588   :  { %1045 = vrot.lane.b32.xlu0 %v923_v11, %s2355_s5 }
 0x589   :  { %1047 = vrot.lane.b32.xlu1 %v926_v40, %s2355_s5 }
 0x58c   :  { %1053 = vrot.lane.b32.xlu0 %v923_v11, %s2356_s6 }
 0x58d   :  { %1055 = vrot.lane.b32.xlu1 %v926_v40, %s2356_s6 }
 0x590   :  { %1061 = vrot.lane.b32.xlu0 %v923_v11, %s2357_s13 }
 0x591   :  { %1063 = vrot.lane.b32.xlu1 %v926_v40, %s2357_s13 }
 0x59e   :  { %v932_v38 = vpop.permute.xlu0 %931 }
 0x59f   :  { %938 = vst.msk [vmem:[%s3507_s4] sm:$0xff] %vm937_vm13, %v932_v38  ;;  %v934_v31 = vpop.permute.xlu1 %933 }
 0x5a0   :  { %939 = vst.msk [vmem:[%s3507_s4 + $0x10] sm:$0xff] %vm937_vm13, %v934_v31 }
 0x5a2   :  { %v941_v45 = vpop.permute.xlu0 %940 }
 0x5a3   :  { %947 = vst.msk [vmem:[%s3507_s4] sm:$0xff] %vm946_vm14, %v941_v45  ;;  %v943_v57 = vpop.permute.xlu1 %942 }
 0x5a4   :  { %948 = vst.msk [vmem:[%s3507_s4 + $0x10] sm:$0xff] %vm946_vm14, %v943_v57 }
 0x5a6   :  { %v950_v18 = vpop.permute.xlu0 %949 }
 0x5a7   :  { %956 = vst.msk [vmem:[%s3507_s4] sm:$0xff] %vm955_vm15, %v950_v18  ;;  %v952_v15 = vpop.permute.xlu1 %951 }
 0x5a8   :  { %957 = vst.msk [vmem:[%s3507_s4 + $0x10] sm:$0xff] %vm955_vm15, %v952_v15 }
 0x5aa   :  { %v959_v2 = vpop.permute.xlu0 %958 }
 0x5ab   :  { %965 = vst.msk [vmem:[%s3507_s4] sm:$0xff] %vm964_vm0, %v959_v2  ;;  %v961_v55 = vpop.permute.xlu1 %960 }
 0x5ac   :  { %966 = vst.msk [vmem:[%s3507_s4 + $0x10] sm:$0xff] %vm964_vm0, %v961_v55 }
 0x5ae   :  { %v968_v21 = vpop.permute.xlu0 %967 }
 0x5af   :  { %974 = vst.msk [vmem:[%s3507_s4] sm:$0xff] %vm973_vm1, %v968_v21  ;;  %v970_v4 = vpop.permute.xlu1 %969 }
 0x5b0   :  { %975 = vst.msk [vmem:[%s3507_s4 + $0x10] sm:$0xff] %vm973_vm1, %v970_v4 }
 0x5b2   :  { %v979_v28 = vpop.permute.xlu0 %978 }
 0x5b3   :  { %985 = vst.msk [vmem:[%s3507_s4] sm:$0xff] %vm984_vm3, %v979_v28  ;;  %v981_v58 = vpop.permute.xlu1 %980 }
 0x5b4   :  { %986 = vst.msk [vmem:[%s3507_s4 + $0x10] sm:$0xff] %vm984_vm3, %v981_v58 }
 0x5c3   :  { %v1880_v5 = vpop.permute.xlu0 %1879 }
 0x5c4   :  { %v3229_v16 = vpop.permute.xlu1 %1884 }
 0x5c7   :  { %v988_v33 = vpop.permute.xlu0 %987 }
 0x5c8   :  { %994 = vst.msk [vmem:[%s3507_s4] sm:$0xff] %vm993_vm5, %v988_v33  ;;  %v990_v26 = vpop.permute.xlu1 %989 }
 0x5c9   :  { %995 = vst.msk [vmem:[%s3507_s4 + $0x10] sm:$0xff] %vm993_vm5, %v990_v26 }
 0x5cb   :  { %v997_v59 = vpop.permute.xlu0 %996 }
 0x5cc   :  { %1002 = vst.msk [vmem:[%s3507_s4 + $0x8] sm:$0xff] %vm533_vm6, %v997_v59  ;;  %v999_v7 = vpop.permute.xlu1 %998 }
 0x5cd   :  { %1003 = vst.msk [vmem:[%s3507_s4 + $0x18] sm:$0xff] %vm533_vm6, %v999_v7 }
 0x5cf   :  { %v1005_v32 = vpop.permute.xlu0 %1004 }
 0x5d0   :  { %1010 = vst.msk [vmem:[%s3507_s4 + $0x8] sm:$0xff] %vm937_vm13, %v1005_v32  ;;  %v1007_v23 = vpop.permute.xlu1 %1006 }
 0x5d1   :  { %1011 = vst.msk [vmem:[%s3507_s4 + $0x18] sm:$0xff] %vm937_vm13, %v1007_v23 }
 0x5d3   :  { %v1780_v24 = vpop.permute.xlu0 %1779 }
 0x5d4   :  { %v1790_v51 = vpop.permute.xlu1 %1789 }
 0x5d5   :  { %v1806_v3 = vadd.f32 %v3025_v63, %v1790_v51 }
 0x5d7   :  { %v1782_v42 = vpop.permute.xlu0 %1781 }
 0x5d8   :  { %v1784_v1 = vpop.permute.xlu1 %1783  ;;  %v1791_v60 = vsel %vm235_vm2, %v1780_v24, %v1782_v42 }
 0x5d9   :  { %v1792_v22 = vsel %vm235_vm2, %v1782_v42, %v1784_v1  ;;  %v1803_v29 = vadd.f32 %v1784_v1, %v3027_v37  ;;  %v1801_v44 = vadd.f32 %v1791_v60, %v3015_v54 }
 0x5da   :  { %v1802_v48 = vadd.f32 %v1792_v22, %v3017_v0 }
 0x5db   :  { %v1788_v34 = vpop.permute.xlu0 %1787 }
 0x5dc   :  { %v1824_v49 = vpop.permute.xlu1 %1823  ;;  %v1794_v39 = vsel %vm235_vm2, %v1788_v34, %v1790_v51 }
 0x5dd   :  { %v1840_v52 = vadd.f32 %v1824_v49, %v1806_v3  ;;  %v1805_v0 = vadd.f32 %v1794_v39, %v3023_v43 }
 0x5df   :  { %v1814_v19 = vpop.permute.xlu0 %1813 }
 0x5e0   :  { %v1818_v30 = vpop.permute.xlu1 %1817 }
 0x5e1   :  { %v1837_v53 = vadd.f32 %v1818_v30, %v1803_v29 }
 0x5e3   :  { %v1816_v25 = vpop.permute.xlu0 %1815 }
 0x5e4   :  { %v1858_v35 = vpop.permute.xlu1 %1857  ;;  %v1825_v50 = vsel %vm397_vm4, %v1814_v19, %v1816_v25  ;;  %v1826_v63 = vsel %vm397_vm4, %v1816_v25, %v1818_v30 }
 0x5e5   :  { %v1874_v10 = vadd.f32 %v1858_v35, %v1840_v52  ;;  %v1835_v12 = vadd.f32 %v1825_v50, %v1801_v44  ;;  %v1836_v62 = vadd.f32 %v1826_v63, %v1802_v48 }
 0x5e7   :  { %v1822_v13 = vpop.permute.xlu0 %1821  ;;  %v1892_v47 = vadd.f32 %v3229_v16, %v1874_v10 }
 0x5e8   :  { %v1786_v8 = vpop.permute.xlu1 %1785  ;;  %v1828_v11 = vsel %vm397_vm4, %v1822_v13, %v1824_v49 }
 0x5e9   :  { %v1898_v41 = vmul.f32 0.5, %v1892_v47  ;;  %v1793_v17 = vsel %vm235_vm2, %v1786_v8, %v1788_v34  ;;  %v1839_v2 = vadd.f32 %v1828_v11, %v1805_v0  ;;  %vm1030_vm2 = vcmask 506880  }
 0x5ea   :  { %v1804_v18 = vadd.f32 %v1793_v17, %v3021_v61 }
 0x5eb   :  { %v1848_v27 = vpop.permute.xlu0 %1847  ;;  %2321 = vtanh.f32 %v1898_v41 }
 0x5ec   :  { %v1852_v20 = vpop.permute.xlu1 %1851 }
 0x5ed   :  { %v1871_v56 = vadd.f32 %v1852_v20, %v1837_v53 }
 0x5ef   :  { %v1850_v46 = vpop.permute.xlu0 %1849  ;;  %v1889_v6 = vadd.f32 %v1880_v5, %v1871_v56 }
 0x5f0   :  { %v1859_v37 = vsel %vm862_vm12, %v1848_v27, %v1850_v46  ;;  %v1860_v36 = vsel %vm862_vm12, %v1850_v46, %v1852_v20  ;;  %v1820_v14 = vpop.permute.xlu1 %1819 }
 0x5f1   :  { %v1869_v9 = vadd.f32 %v1859_v37, %v1835_v12  ;;  %v1870_v54 = vadd.f32 %v1860_v36, %v1836_v62  ;;  %v1895_v40 = vmul.f32 0.5, %v1889_v6  ;;  %v1827_v45 = vsel %vm397_vm4, %v1820_v14, %v1822_v13 }
 0x5f2   :  { %v1838_v21 = vadd.f32 %v1827_v45, %v1804_v18 }
 0x5f3   :  { %v1887_v38 = vadd.f32 %v1880_v5, %v1869_v9  ;;  %v3270_v31 = vadd.f32 %v1880_v5, %v1870_v54  ;;  %v1856_v57 = vpop.permute.xlu0 %1855  ;;  %2323 = vtanh.f32 %v1895_v40 }
 0x5f4   :  { %v1862_v15 = vsel %vm862_vm12, %v1856_v57, %v1858_v35  ;;  %v1854_v4 = vpop.permute.xlu1 %1853 }
 0x5f5   :  { %v1893_v55 = vmul.f32 0.5, %v1887_v38  ;;  %v2322_v43 = vpop.eup %2321  ;;  %v1894_v28 = vmul.f32 0.5, %v3270_v31  ;;  %v1873_v58 = vadd.f32 %v1862_v15, %v1839_v2  ;;  %v1861_v5 = vsel %vm862_vm12, %v1854_v4, %v1856_v57 }
 0x5f6   :  { %v1910_v26 = vadd.f32 1.0, %v2322_v43  ;;  %v1872_v59 = vadd.f32 %v1861_v5, %v1838_v21 }
 0x5f7   :  { %2325 = vtanh.f32 %v1893_v55  ;;  %v1013_v33 = vpop.permute.xlu0 %1012  ;;  %v3283_v23 = vadd.f32 %v3229_v16, %v1873_v58 }
 0x5f8   :  { %1018 = vst.msk [vmem:[%s3507_s4 + $0x8] sm:$0xff] %vm946_vm14, %v1013_v33  ;;  %v1916_v61 = vmul.f32 0.5, %v1910_v26  ;;  %v1890_v7 = vadd.f32 %v3229_v16, %v1872_v59  ;;  %v1015_v32 = vpop.permute.xlu1 %1014  ;;  %2327 = vtanh.f32 %v1894_v28 }
 0x5f9   :  { %1019 = vst.msk [vmem:[%s3507_s4 + $0x18] sm:$0xff] %vm946_vm14, %v1015_v32  ;;  %v1897_v49 = vmul.f32 0.5, %v3283_v23 }
 0x5fa   :  { %v3289_v51 = vmul.f32 %v1916_v61, %v1892_v47  ;;  %v1896_v42 = vmul.f32 0.5, %v1890_v7 }
 0x5fb   :  { %v1023_v24 = vpop.permute.xlu0 %1022 }
 0x5fc   :  { %2329 = vtanh.f32 %v1896_v42  ;;  %2018 = vrot.lane.b32.xlu1 %v3289_v51, %s2353_s0  ;;  %v1025_v1 = vpop.permute.xlu1 %1024 }
 0x5fd   :  { %v2324_v34 = vpop.eup %2323  ;;  %v1031_v16 = vsel %vm1030_vm2, %v1023_v24, %v1025_v1  ;;  %2331 = vtanh.f32 %v1897_v49 }
 0x5fe   :  { %v1907_v30 = vadd.f32 1.0, %v2324_v34  ;;  %1035 = vst.msk [vmem:[%s3507_s4 + $0x8] sm:$0xff] %vm955_vm15, %v1031_v16 }
 0x5ff   :  { %v1027_v19 = vpop.permute.xlu0 %1026 }
 0x600   :  { %v1913_v25 = vmul.f32 0.5, %v1907_v30  ;;  %2028 = vrot.lane.b32.xlu1 %v3289_v51, %s2354_s8  ;;  %v1029_v35 = vpop.permute.xlu1 %1028 }
 0x601   :  { %v2326_v3 = vpop.eup %2325  ;;  %v1032_v10 = vsel %vm1030_vm2, %v1027_v19, %v1029_v35 }
 0x602   :  { %v1905_v52 = vadd.f32 1.0, %v2326_v3  ;;  %v1919_v47 = vmul.f32 %v1913_v25, %v1889_v6  ;;  %1036 = vst.msk [vmem:[%s3507_s4 + $0x18] sm:$0xff] %vm955_vm15, %v1032_v10  ;;  %v2328_v22 = vpop.eup %2327 }
 0x603   :  { %v1038_v13 = vpop.permute.xlu0 %1037  ;;  %v1906_v50 = vadd.f32 1.0, %v2328_v22 }
 0x604   :  { %v1911_v60 = vmul.f32 0.5, %v1905_v52  ;;  %1043 = vst.msk [vmem:[%s3507_s4 + $0x8] sm:$0xff] %vm964_vm0, %v1038_v13  ;;  %2036 = vrot.lane.b32.xlu1 %v3289_v51, %s2355_s5  ;;  %2026 = vrot.lane.b32.xlu0 %v1919_v47, %s2354_s8  ;;  %v1040_v29 = vpop.permute.xlu1 %1039 }
 0x605   :  { %1044 = vst.msk [vmem:[%s3507_s4 + $0x18] sm:$0xff] %vm964_vm0, %v1040_v29  ;;  %v1912_v20 = vmul.f32 0.5, %v1906_v50 }
 0x606   :  { %v1917_v8 = vmul.f32 %v1911_v60, %v1887_v38  ;;  %v2330_v27 = vpop.eup %2329 }
 0x607   :  { %v1046_v41 = vpop.permute.xlu0 %1045  ;;  %v1908_v63 = vadd.f32 1.0, %v2330_v27  ;;  %v2332_v39 = vpop.eup %2331  ;;  %v1918_v46 = vmul.f32 %v1912_v20, %v3270_v31 }
 0x608   :  { %2116 = vst.msk [vmem:[%s3507_s4 + $0x20] sm:$0xff] %vm533_vm6, %v1917_v8  ;;  %2044 = vrot.lane.b32.xlu1 %v3289_v51, %s2356_s6  ;;  %2034 = vrot.lane.b32.xlu0 %v1919_v47, %s2355_s5  ;;  %v1048_v44 = vpop.permute.xlu1 %1047  ;;  %v1909_v37 = vadd.f32 1.0, %v2332_v39 }
 0x609   :  { %1051 = vst.msk [vmem:[%s3507_s4 + $0x8] sm:$0xff] %vm973_vm1, %v1046_v41  ;;  %v1914_v48 = vmul.f32 0.5, %v1908_v63  ;;  %1052 = vst.msk [vmem:[%s3507_s4 + $0x18] sm:$0xff] %vm973_vm1, %v1048_v44 }
 0x60a   :  { %v1915_v17 = vmul.f32 0.5, %v1909_v37 }
 0x60b   :  { %v1054_v53 = vpop.permute.xlu0 %1053  ;;  %v1920_v12 = vmul.f32 %v1914_v48, %v1890_v7 }
 0x60c   :  { %1059 = vst.msk [vmem:[%s3507_s4 + $0x8] sm:$0xff] %vm984_vm3, %v1054_v53  ;;  %2042 = vrot.lane.b32.xlu0 %v1919_v47, %s2356_s6  ;;  %2014 = vrot.lane.b32.xlu1 %v1919_v47, %s2353_s0  ;;  %v1056_v62 = vpop.permute.xlu1 %1055  ;;  %v1921_v6 = vmul.f32 %v1915_v17, %v3283_v23 }
 0x60d   :  { %2117 = vst.msk [vmem:[%s3507_s4 + $0x30] sm:$0xff] %vm533_vm6, %v1920_v12 }
 0x60e   :  { %1060 = vst.msk [vmem:[%s3507_s4 + $0x18] sm:$0xff] %vm984_vm3, %v1056_v62 }
 0x60f   :  { %v1062_v56 = vpop.permute.xlu0 %1061 }
 0x610   :  { %1067 = vst.msk [vmem:[%s3507_s4 + $0x8] sm:$0xff] %vm993_vm5, %v1062_v56  ;;  %1928 = vrot.lane.b32.xlu0 %v1917_v8, %s2343_s3  ;;  %1986 = vrot.lane.b32.xlu1 %v1918_v46, %s2350_s29  ;;  %v1064_v36 = vpop.permute.xlu1 %1063 }
 0x611   :  { %1068 = vst.msk [vmem:[%s3507_s4 + $0x18] sm:$0xff] %vm993_vm5, %v1064_v36 }
 0x614   :  { %1994 = vrot.lane.b32.xlu0 %v1918_v46, %s2351_s30  ;;  %1930 = vrot.lane.b32.xlu1 %v1920_v12, %s2343_s3 }
 0x618   :  { %1936 = vrot.lane.b32.xlu0 %v1917_v8, %s2344_s23  ;;  %1996 = vrot.lane.b32.xlu1 %v1921_v6, %s2351_s30 }
 0x61c   :  { %2002 = vrot.lane.b32.xlu0 %v1918_v46, %s2352_s1  ;;  %1938 = vrot.lane.b32.xlu1 %v1920_v12, %s2344_s23 }
 0x620   :  { %2012 = vrot.lane.b32.xlu0 %v1918_v46, %s2353_s0  ;;  %2004 = vrot.lane.b32.xlu1 %v1921_v6, %s2352_s1 }
 0x624   :  { %1944 = vrot.lane.b32.xlu0 %v1917_v8, %s2345_s24  ;;  %1946 = vrot.lane.b32.xlu1 %v1920_v12, %s2345_s24 }
 0x628   :  { %1952 = vrot.lane.b32.xlu0 %v1917_v8, %s2346_s25  ;;  %1954 = vrot.lane.b32.xlu1 %v1920_v12, %s2346_s25 }
 0x62c   :  { %1960 = vrot.lane.b32.xlu0 %v1917_v8, %s2347_s26  ;;  %1962 = vrot.lane.b32.xlu1 %v1920_v12, %s2347_s26 }
 0x630   :  { %1970 = vrot.lane.b32.xlu0 %v1918_v46, %s2348_s27  ;;  %1972 = vrot.lane.b32.xlu1 %v1921_v6, %s2348_s27 }
 0x634   :  { %1988 = vrot.lane.b32.xlu0 %v1921_v6, %s2350_s29  ;;  %1980 = vrot.lane.b32.xlu1 %v1921_v6, %s2349_s28 }
 0x638   :  { %2016 = vrot.lane.b32.xlu0 %v1921_v6, %s2353_s0  ;;  %2052 = vrot.lane.b32.xlu1 %v3289_v51, %s2357_s13 }
 0x63c   :  { %1978 = vrot.lane.b32.xlu0 %v1918_v46, %s2349_s28 }
 0x640   :  { %2050 = vrot.lane.b32.xlu0 %v1919_v47, %s2357_s13 }
 0x66e   :  { %v2019_v9 = vpop.permute.xlu1 %2018 }
 0x672   :  { %v2029_v54 = vpop.permute.xlu1 %2028 }
 0x676   :  { %v2027_v0 = vpop.permute.xlu0 %2026  ;;  %v2037_v11 = vpop.permute.xlu1 %2036 }
 0x67a   :  { %v2035_v14 = vpop.permute.xlu0 %2034  ;;  %v2045_v40 = vpop.permute.xlu1 %2044 }
 0x67e   :  { %v2043_v38 = vpop.permute.xlu0 %2042  ;;  %v2015_v31 = vpop.permute.xlu1 %2014 }
 0x682   :  { %v1929_v45 = vpop.permute.xlu0 %1928  ;;  %v1987_v57 = vpop.permute.xlu1 %1986 }
 0x683   :  { %2118 = vst.msk [vmem:[%s3507_s4 + $0x20] sm:$0xff] %vm937_vm13, %v1929_v45 }
 0x684   :  { %2132 = vst.msk [vmem:[%s3507_s4 + $0x28] sm:$0xff] %vm533_vm6, %v1987_v57 }
 0x686   :  { %v1995_v18 = vpop.permute.xlu0 %1994  ;;  %v1931_v15 = vpop.permute.xlu1 %1930 }
 0x687   :  { %2134 = vst.msk [vmem:[%s3507_s4 + $0x28] sm:$0xff] %vm937_vm13, %v1995_v18  ;;  %2119 = vst.msk [vmem:[%s3507_s4 + $0x30] sm:$0xff] %vm937_vm13, %v1931_v15 }
 0x68a   :  { %v1937_v2 = vpop.permute.xlu0 %1936  ;;  %v1997_v55 = vpop.permute.xlu1 %1996 }
 0x68b   :  { %2120 = vst.msk [vmem:[%s3507_s4 + $0x20] sm:$0xff] %vm946_vm14, %v1937_v2 }
 0x68e   :  { %v2003_v21 = vpop.permute.xlu0 %2002  ;;  %v1939_v4 = vpop.permute.xlu1 %1938 }
 0x68f   :  { %2136 = vst.msk [vmem:[%s3507_s4 + $0x28] sm:$0xff] %vm946_vm14, %v2003_v21  ;;  %2121 = vst.msk [vmem:[%s3507_s4 + $0x30] sm:$0xff] %vm946_vm14, %v1939_v4 }
 0x692   :  { %v2013_v43 = vpop.permute.xlu0 %2012  ;;  %v2005_v28 = vpop.permute.xlu1 %2004 }
 0x693   :  { %v2020_v58 = vsel %vm1030_vm2, %v2013_v43, %v2015_v31 }
 0x694   :  { %2138 = vst.msk [vmem:[%s3507_s4 + $0x28] sm:$0xff] %vm955_vm15, %v2020_v58 }
 0x695   :  { %2140 = vst.msk [vmem:[%s3507_s4 + $0x28] sm:$0xff] %vm964_vm0, %v2027_v0 }
 0x696   :  { %2142 = vst.msk [vmem:[%s3507_s4 + $0x28] sm:$0xff] %vm973_vm1, %v2035_v14  ;;  %v1945_v5 = vpop.permute.xlu0 %1944  ;;  %v1947_v33 = vpop.permute.xlu1 %1946 }
 0x697   :  { %2144 = vst.msk [vmem:[%s3507_s4 + $0x28] sm:$0xff] %vm984_vm3, %v2043_v38 }
 0x698   :  { %2122 = vst.msk [vmem:[%s3507_s4 + $0x20] sm:$0xff] %vm955_vm15, %v1945_v5  ;;  %2123 = vst.msk [vmem:[%s3507_s4 + $0x30] sm:$0xff] %vm955_vm15, %v1947_v33 }
 0x69a   :  { %v1953_v26 = vpop.permute.xlu0 %1952  ;;  %v1955_v59 = vpop.permute.xlu1 %1954 }
 0x69b   :  { %2124 = vst.msk [vmem:[%s3507_s4 + $0x20] sm:$0xff] %vm964_vm0, %v1953_v26  ;;  %2125 = vst.msk [vmem:[%s3507_s4 + $0x30] sm:$0xff] %vm964_vm0, %v1955_v59 }
 0x69e   :  { %v1961_v61 = vpop.permute.xlu0 %1960  ;;  %v1963_v7 = vpop.permute.xlu1 %1962 }
 0x69f   :  { %2126 = vst.msk [vmem:[%s3507_s4 + $0x20] sm:$0xff] %vm973_vm1, %v1961_v61  ;;  %2127 = vst.msk [vmem:[%s3507_s4 + $0x30] sm:$0xff] %vm973_vm1, %v1963_v7 }
 0x6a2   :  { %v1971_v32 = vpop.permute.xlu0 %1970  ;;  %v1973_v23 = vpop.permute.xlu1 %1972 }
 0x6a3   :  { %2128 = vst.msk [vmem:[%s3507_s4 + $0x20] sm:$0xff] %vm984_vm3, %v1971_v32  ;;  %2129 = vst.msk [vmem:[%s3507_s4 + $0x30] sm:$0xff] %vm984_vm3, %v1973_v23 }
 0x6a6   :  { %v1989_v24 = vpop.permute.xlu0 %1988  ;;  %v1981_v51 = vpop.permute.xlu1 %1980 }
 0x6a7   :  { %2133 = vst.msk [vmem:[%s3507_s4 + $0x38] sm:$0xff] %vm533_vm6, %v1989_v24 }
 0x6a8   :  { %2131 = vst.msk [vmem:[%s3507_s4 + $0x30] sm:$0xff] %vm993_vm5, %v1981_v51 }
 0x6a9   :  { %2135 = vst.msk [vmem:[%s3507_s4 + $0x38] sm:$0xff] %vm937_vm13, %v1997_v55 }
 0x6aa   :  { %2137 = vst.msk [vmem:[%s3507_s4 + $0x38] sm:$0xff] %vm946_vm14, %v2005_v28  ;;  %v2017_v42 = vpop.permute.xlu0 %2016  ;;  %v2053_v49 = vpop.permute.xlu1 %2052 }
 0x6ab   :  { %v2021_v1 = vsel %vm1030_vm2, %v2017_v42, %v2019_v9 }
 0x6ac   :  { %2139 = vst.msk [vmem:[%s3507_s4 + $0x38] sm:$0xff] %vm955_vm15, %v2021_v1 }
 0x6ad   :  { %2141 = vst.msk [vmem:[%s3507_s4 + $0x38] sm:$0xff] %vm964_vm0, %v2029_v54 }
 0x6ae   :  { %2143 = vst.msk [vmem:[%s3507_s4 + $0x38] sm:$0xff] %vm973_vm1, %v2037_v11  ;;  %v1979_v34 = vpop.permute.xlu0 %1978 }
 0x6af   :  { %2145 = vst.msk [vmem:[%s3507_s4 + $0x38] sm:$0xff] %vm984_vm3, %v2045_v40 }
 0x6b0   :  { %2130 = vst.msk [vmem:[%s3507_s4 + $0x20] sm:$0xff] %vm993_vm5, %v1979_v34  ;;  %2147 = vst.msk [vmem:[%s3507_s4 + $0x38] sm:$0xff] %vm993_vm5, %v2053_v49 }
 0x6b2   :  { %v2051_v16 = vpop.permute.xlu0 %2050 }
 0x6b3   :  { %2146 = vst.msk [vmem:[%s3507_s4 + $0x28] sm:$0xff] %vm993_vm5, %v2051_v16 }

</bundles_post_ra>
